<compile_context>
chip_gen: v7x
topology: tpu7x:2x2x1
jax: 0.10.0
libtpu: 0.0.40
codegen_flags: <defaults>
</compile_context>

<pallas_src>
import math
from functools import partial

import jax
import jax.numpy as jnp
from jax.experimental import pallas as pl
from jax.experimental.pallas import tpu as pltpu


def _flash_attn_kernel(xq_ref, xkv_ref, wq_ref, wk_ref, wv_ref, wo_ref,
                       bq_ref, bk_ref, bv_ref, bo_ref,
                       o_ref,
                       q_scr, m_scr, l_scr, acc_scr,
                       *, scale, compute_dtype, approx_recip):
    ki = pl.program_id(2)

    @pl.when(ki == 0)
    def _init():
        # Project the query tile once per (batch, query-tile); keep it (scaled)
        # in VMEM scratch for all KV steps.
        xq = xq_ref[...].astype(compute_dtype)
        q = jnp.dot(xq, wq_ref[...], preferred_element_type=jnp.float32)
        q = (q + bq_ref[...]) * scale
        q_scr[...] = q.astype(compute_dtype)
        m_scr[...] = jnp.full_like(m_scr, -jnp.inf)
        l_scr[...] = jnp.zeros_like(l_scr)
        acc_scr[...] = jnp.zeros_like(acc_scr)

    # K/V projection for the current KV tile (bf16 MXU, f32 accumulate).
    xkv = xkv_ref[...].astype(compute_dtype)
    k = (jnp.dot(xkv, wk_ref[...], preferred_element_type=jnp.float32)
         + bk_ref[...]).astype(compute_dtype)
    v = (jnp.dot(xkv, wv_ref[...], preferred_element_type=jnp.float32)
         + bv_ref[...]).astype(compute_dtype)

    # Scores: NT matmul (contract last dims of q and k) -> no explicit transpose.
    s = jax.lax.dot_general(q_scr[...], k, (((1,), (1,)), ((), ())),
                            preferred_element_type=jnp.float32)      # (TQ, TK)

    # Online (flash) softmax update in f32.
    m_prev = m_scr[...]
    m_new = jnp.maximum(m_prev, jnp.max(s, axis=-1, keepdims=True))
    alpha = jnp.exp(m_prev - m_new)
    p = jnp.exp(s - m_new)
    l_scr[...] = alpha * l_scr[...] + jnp.sum(p, axis=-1, keepdims=True)
    acc_scr[...] = alpha * acc_scr[...] + jnp.dot(
        p.astype(compute_dtype), v, preferred_element_type=jnp.float32)
    m_scr[...] = m_new

    @pl.when(ki == pl.num_programs(2) - 1)
    def _finalize():
        out = acc_scr[...] * pl.reciprocal(l_scr[...], approx=approx_recip)
        out = jnp.dot(out.astype(compute_dtype), wo_ref[...],
                      preferred_element_type=jnp.float32) + bo_ref[...]
        # Residual add (x in NSC layout) and lane-dense store.
        o_ref[...] = (out + xq_ref[...].astype(jnp.float32)).astype(o_ref.dtype)


def _pad_axis(a, axis, new):
    pad = new - a.shape[axis]
    if pad == 0:
        return a
    widths = [(0, 0)] * a.ndim
    widths[axis] = (0, pad)
    return jnp.pad(a, widths)


def _pick_tile(s, target):
    """Largest tile <= target dividing s; multiple of 8 unless it equals s."""
    if s <= target:
        return s
    for t in range(target, 7, -1):
        if s % t == 0 and t % 8 == 0:
            return t
    return s


def vae_attention_block(x_nchw, w_qkv, b_qkv, w_out, b_out,
                        *, compute_dtype=jnp.bfloat16,
                        tq_target=256, tk_target=512):
    """x_nchw: (N, C, H, W).  Linear weights are pre-transposed for x @ W
    (w_qkv: (C, 3C), w_out: (C, C)) -- equivalent to PyTorch's x @ weight.T."""
    N, C, H, W = x_nchw.shape
    S = H * W
    Cp = ((C + 127) // 128) * 128          # lane-dense channel padding
    TQ = _pick_tile(S, tq_target)
    TK = _pick_tile(S, tk_target)

    # NCHW -> NSC (matches view + transpose in the reference forward).
    x_nsc = jnp.transpose(x_nchw.reshape(N, C, S), (0, 2, 1))      # (N, S, C)
    x_pad = _pad_axis(x_nsc, 2, Cp)                                # (N, S, Cp)

    # Split the fused QKV projection into per-matrix, lane-aligned weights.
    wq = w_qkv[:, 0 * C:1 * C]
    wk = w_qkv[:, 1 * C:2 * C]
    wv = w_qkv[:, 2 * C:3 * C]
    bq, bk, bv = b_qkv[0 * C:1 * C], b_qkv[1 * C:2 * C], b_qkv[2 * C:3 * C]

    def prep_w(w):   # (C, C) -> (Cp, Cp) zero-padded, compute dtype for the MXU
        return _pad_axis(_pad_axis(w, 0, Cp), 1, Cp).astype(compute_dtype)

    def prep_b(b):   # (C,) -> (1, Cp), kept f32 (added to f32 accumulators)
        return _pad_axis(b, 0, Cp).reshape(1, Cp).astype(jnp.float32)

    wq_p, wk_p, wv_p, wo_p = prep_w(wq), prep_w(wk), prep_w(wv), prep_w(w_out)
    bq_p, bk_p, bv_p, bo_p = prep_b(bq), prep_b(bk), prep_b(bv), prep_b(b_out)

    scale = 1.0 / math.sqrt(C)             # d_head == C (single head)

    kernel = partial(_flash_attn_kernel, scale=scale,
                     compute_dtype=compute_dtype,
                     approx_recip=(compute_dtype != jnp.float32))

    wmap = lambda b, qi, ki: (0, 0)

    # NOTE: constant-index weight blocks stay resident across the grid; they
    # could additionally use pipeline_mode=pl.Buffered(1) to drop the second
    # pipeline buffer for very large C.
    out_pad = pl.pallas_call(
        kernel,
        out_shape=jax.ShapeDtypeStruct((N, S, Cp), x_nchw.dtype),
        grid_spec=pltpu.PrefetchScalarGridSpec(
            num_scalar_prefetch=0,
            grid=(N, S // TQ, S // TK),
            in_specs=[
                pl.BlockSpec((None, TQ, Cp), lambda b, qi, ki: (b, qi, 0)),  # x (query/residual)
                pl.BlockSpec((None, TK, Cp), lambda b, qi, ki: (b, ki, 0)),  # x (key/value)
                pl.BlockSpec((Cp, Cp), wmap),   # Wq
                pl.BlockSpec((Cp, Cp), wmap),   # Wk
                pl.BlockSpec((Cp, Cp), wmap),   # Wv
                pl.BlockSpec((Cp, Cp), wmap),   # Wout
                pl.BlockSpec((1, Cp), wmap),    # bq
                pl.BlockSpec((1, Cp), wmap),    # bk
                pl.BlockSpec((1, Cp), wmap),    # bv
                pl.BlockSpec((1, Cp), wmap),    # bout
            ],
            out_specs=pl.BlockSpec((None, TQ, Cp), lambda b, qi, ki: (b, qi, 0)),
            scratch_shapes=[
                pltpu.VMEM((TQ, Cp), compute_dtype),   # scaled Q tile
                pltpu.VMEM((TQ, 1), jnp.float32),      # running max m
                pltpu.VMEM((TQ, 1), jnp.float32),      # running denom l
                pltpu.VMEM((TQ, Cp), jnp.float32),     # output accumulator
            ],
        ),
        compiler_params=pltpu.CompilerParams(
            dimension_semantics=("parallel", "parallel", "arbitrary"),
            vmem_limit_bytes=32 * 1024 * 1024,
        ),
    )(x_pad, x_pad, wq_p, wk_p, wv_p, wo_p, bq_p, bk_p, bv_p, bo_p)

    # Drop channel padding, NSC -> NCHW (matches transpose + view in reference).
    out_nsc = out_pad[:, :, :C]
    return jnp.transpose(out_nsc, (0, 2, 1)).reshape(N, C, H, W)


def reference_forward(x_nchw, w_qkv, b_qkv, w_out, b_out):
    """Pure-JAX f32 reference of the PyTorch forward (for a sanity check)."""
    N, C, H, W = x_nchw.shape
    S = H * W
    x = jnp.transpose(x_nchw.reshape(N, C, S), (0, 2, 1))          # (N, S, C)
    qkv = x @ w_qkv + b_qkv                                        # (N, S, 3C)
    q, k, v = qkv[..., :C], qkv[..., C:2 * C], qkv[..., 2 * C:]
    scores = jnp.einsum("nsc,ntc->nst", q, k) / math.sqrt(C)
    attn = jax.nn.softmax(scores, axis=-1)
    out = jnp.einsum("nst,ntc->nsc", attn, v)
    out = out @ w_out + b_out
    out = jnp.transpose(out, (0, 2, 1)).reshape(N, C, H, W)
    return out + x_nchw


if __name__ == "__main__":
    # Small shapes consistent with the module: attn_dim (C) = 32,
    # num_groups = 8, num_heads = 1, batch = 2, spatial 8x8 -> S = 64.
    N, C, H, W = 2, 32, 8, 8
    NUM_GROUPS = 8   # GroupNorm(num_groups, C) exists in the module but is never applied in forward
    key = jax.random.PRNGKey(0)
    kx, k1, k2, k3, k4 = jax.random.split(key, 5)

    x = jax.random.normal(kx, (N, C, H, W), dtype=jnp.float32)

    # Deterministic synthetic parameters (Linear weights stored pre-transposed
    # so the kernel does x @ W; equivalent to PyTorch's x @ weight.T).
    scale = 1.0 / math.sqrt(C)
    w_qkv = jax.random.normal(k1, (C, 3 * C), dtype=jnp.float32) * scale
    b_qkv = jax.random.normal(k2, (3 * C,), dtype=jnp.float32) * 0.1
    w_out = jax.random.normal(k3, (C, C), dtype=jnp.float32) * scale
    b_out = jax.random.normal(k4, (C,), dtype=jnp.float32) * 0.1

    # Unused GroupNorm parameters (present in the module, never applied in forward).
    gn_weight = jnp.ones((C,), dtype=jnp.float32)
    gn_bias = jnp.zeros((C,), dtype=jnp.float32)

    ref = reference_forward(x, w_qkv, b_qkv, w_out, b_out)

    # Performance config: bf16 MXU inputs, f32 accumulation.
    out_bf16 = vae_attention_block(x, w_qkv, b_qkv, w_out, b_out,
                                   compute_dtype=jnp.bfloat16)
    out_bf16 = jax.block_until_ready(out_bf16)
    assert out_bf16.shape == (N, C, H, W)
    assert jnp.allclose(out_bf16, ref, atol=5e-2, rtol=5e-2), \
        "bf16 kernel mismatch vs reference"

    # Exact-precision config for a tight numerical check of the kernel logic.
    out_f32 = vae_attention_block(x, w_qkv, b_qkv, w_out, b_out,
                                  compute_dtype=jnp.float32)
    out_f32 = jax.block_until_ready(out_f32)
    assert jnp.allclose(out_f32, ref, atol=1e-4, rtol=1e-4), \
        "f32 kernel mismatch vs reference"

    print("KERNEL_OK")
</pallas_src>

<mosaic_0001>
module attributes {stable_mosaic.version = 11 : i64} {
  func.func @_flash_attn_kernel(%arg0: i32, %arg1: i32, %arg2: i32, %arg3: memref<1x64x128xf32, #tpu.memory_space<vmem>>, %arg4: memref<1x64x128xf32, #tpu.memory_space<vmem>>, %arg5: memref<128x128xbf16, #tpu.memory_space<vmem>>, %arg6: memref<128x128xbf16, #tpu.memory_space<vmem>>, %arg7: memref<128x128xbf16, #tpu.memory_space<vmem>>, %arg8: memref<128x128xbf16, #tpu.memory_space<vmem>>, %arg9: memref<1x128xf32, #tpu.memory_space<vmem>>, %arg10: memref<1x128xf32, #tpu.memory_space<vmem>>, %arg11: memref<1x128xf32, #tpu.memory_space<vmem>>, %arg12: memref<1x128xf32, #tpu.memory_space<vmem>>, %arg13: memref<1x64x128xf32, #tpu.memory_space<vmem>>, %arg14: memref<64x128xbf16, #tpu.memory_space<vmem>>, %arg15: memref<64x1xf32, #tpu.memory_space<vmem>>, %arg16: memref<64x1xf32, #tpu.memory_space<vmem>>, %arg17: memref<64x128xf32, #tpu.memory_space<vmem>>) attributes {dimension_semantics = [#tpu.dimension_semantics<parallel>, #tpu.dimension_semantics<parallel>, #tpu.dimension_semantics<arbitrary>], iteration_bounds = array<i64: 2, 1, 1>, scalar_prefetch = 0 : i64, scratch_operands = 4 : i64, tpu.core_type = #tpu.core_type<tc>, window_params = [{transform_indices = @transform_0, window_bounds = array<i64: 1, 64, 128>}, {transform_indices = @transform_1, window_bounds = array<i64: 1, 64, 128>}, {pipeline_mode = #tpu.pipeline_mode<synchronous>, transform_indices = @transform_2, window_bounds = array<i64: 128, 128>}, {pipeline_mode = #tpu.pipeline_mode<synchronous>, transform_indices = @transform_3, window_bounds = array<i64: 128, 128>}, {pipeline_mode = #tpu.pipeline_mode<synchronous>, transform_indices = @transform_4, window_bounds = array<i64: 128, 128>}, {pipeline_mode = #tpu.pipeline_mode<synchronous>, transform_indices = @transform_5, window_bounds = array<i64: 128, 128>}, {pipeline_mode = #tpu.pipeline_mode<synchronous>, transform_indices = @transform_6, window_bounds = array<i64: 1, 128>}, {pipeline_mode = #tpu.pipeline_mode<synchronous>, transform_indices = @transform_7, window_bounds = array<i64: 1, 128>}, {pipeline_mode = #tpu.pipeline_mode<synchronous>, transform_indices = @transform_8, window_bounds = array<i64: 1, 128>}, {pipeline_mode = #tpu.pipeline_mode<synchronous>, transform_indices = @transform_9, window_bounds = array<i64: 1, 128>}, {transform_indices = @transform_10, window_bounds = array<i64: 1, 64, 128>}]} {
    %c0_i32 = arith.constant 0 : i32
    %0 = arith.cmpi eq, %arg2, %c0_i32 : i32
    %1 = arith.extui %0 : i1 to i32
    %c0_i32_0 = arith.constant 0 : i32
    %2 = arith.cmpi ne, %1, %c0_i32_0 : i32
    scf.if %2 {
      %c0_32 = arith.constant 0 : index
      %c0_33 = arith.constant 0 : index
      %c0_34 = arith.constant 0 : index
      %46 = vector.load %arg3[%c0_32, %c0_33, %c0_34] : memref<1x64x128xf32, #tpu.memory_space<vmem>>, vector<1x64x128xf32>
      %47 = vector.shape_cast %46 : vector<1x64x128xf32> to vector<64x128xf32>
      %48 = arith.truncf %47 : vector<64x128xf32> to vector<64x128xbf16>
      %c0_35 = arith.constant 0 : index
      %c0_36 = arith.constant 0 : index
      %49 = vector.load %arg5[%c0_35, %c0_36] : memref<128x128xbf16, #tpu.memory_space<vmem>>, vector<128x128xbf16>
      %cst_37 = arith.constant dense<0.000000e+00> : vector<64x128xf32>
      %50 = tpu.matmul %48, %49, %cst_37 {dimension_numbers = #tpu.dot_dimension_numbers<[1], [0], [0], [1], [0, 0, 1, 1], [], []>} : vector<64x128xbf16>, vector<128x128xbf16>, vector<64x128xf32> -> vector<64x128xf32>
      %c0_38 = arith.constant 0 : index
      %c0_39 = arith.constant 0 : index
      %51 = vector.load %arg9[%c0_38, %c0_39] : memref<1x128xf32, #tpu.memory_space<vmem>>, vector<1x128xf32>
      %52 = vector.broadcast %51 : vector<1x128xf32> to vector<64x128xf32>
      %53 = arith.addf %50, %52 : vector<64x128xf32>
      %cst_40 = arith.constant 0.176776692 : f32
      %54 = vector.broadcast %cst_40 : f32 to vector<64x128xf32>
      %55 = arith.mulf %53, %54 : vector<64x128xf32>
      %56 = arith.truncf %55 : vector<64x128xf32> to vector<64x128xbf16>
      %c0_41 = arith.constant 0 : index
      %c0_42 = arith.constant 0 : index
      %57 = vector.load %arg14[%c0_41, %c0_42] : memref<64x128xbf16, #tpu.memory_space<vmem>>, vector<64x128xbf16>
      tpu.vector_store %arg14[%c0_41, %c0_42], %56 {strides = array<i32>} : memref<64x128xbf16, #tpu.memory_space<vmem>>, vector<64x128xbf16>,
      %cst_43 = arith.constant 0xFF800000 : f32
      %58 = vector.broadcast %cst_43 : f32 to vector<64x1xf32>
      %c0_44 = arith.constant 0 : index
      %c0_45 = arith.constant 0 : index
      %59 = vector.load %arg15[%c0_44, %c0_45] : memref<64x1xf32, #tpu.memory_space<vmem>>, vector<64x1xf32>
      tpu.vector_store %arg15[%c0_44, %c0_45], %58 {strides = array<i32>} : memref<64x1xf32, #tpu.memory_space<vmem>>, vector<64x1xf32>,
      %cst_46 = arith.constant 0.000000e+00 : f32
      %60 = vector.broadcast %cst_46 : f32 to vector<64x1xf32>
      %c0_47 = arith.constant 0 : index
      %c0_48 = arith.constant 0 : index
      %61 = vector.load %arg16[%c0_47, %c0_48] : memref<64x1xf32, #tpu.memory_space<vmem>>, vector<64x1xf32>
      tpu.vector_store %arg16[%c0_47, %c0_48], %60 {strides = array<i32>} : memref<64x1xf32, #tpu.memory_space<vmem>>, vector<64x1xf32>,
      %cst_49 = arith.constant 0.000000e+00 : f32
      %62 = vector.broadcast %cst_49 : f32 to vector<64x128xf32>
      %c0_50 = arith.constant 0 : index
      %c0_51 = arith.constant 0 : index
      %63 = vector.load %arg17[%c0_50, %c0_51] : memref<64x128xf32, #tpu.memory_space<vmem>>, vector<64x128xf32>
      tpu.vector_store %arg17[%c0_50, %c0_51], %62 {strides = array<i32>} : memref<64x128xf32, #tpu.memory_space<vmem>>, vector<64x128xf32>,
    } else {
    }
    %c0 = arith.constant 0 : index
    %c0_1 = arith.constant 0 : index
    %c0_2 = arith.constant 0 : index
    %3 = vector.load %arg4[%c0, %c0_1, %c0_2] : memref<1x64x128xf32, #tpu.memory_space<vmem>>, vector<1x64x128xf32>
    %4 = vector.shape_cast %3 : vector<1x64x128xf32> to vector<64x128xf32>
    %5 = arith.truncf %4 : vector<64x128xf32> to vector<64x128xbf16>
    %c0_3 = arith.constant 0 : index
    %c0_4 = arith.constant 0 : index
    %6 = vector.load %arg6[%c0_3, %c0_4] : memref<128x128xbf16, #tpu.memory_space<vmem>>, vector<128x128xbf16>
    %cst = arith.constant dense<0.000000e+00> : vector<64x128xf32>
    %7 = tpu.matmul %5, %6, %cst {dimension_numbers = #tpu.dot_dimension_numbers<[1], [0], [0], [1], [0, 0, 1, 1], [], []>} : vector<64x128xbf16>, vector<128x128xbf16>, vector<64x128xf32> -> vector<64x128xf32>
    %c0_5 = arith.constant 0 : index
    %c0_6 = arith.constant 0 : index
    %8 = vector.load %arg10[%c0_5, %c0_6] : memref<1x128xf32, #tpu.memory_space<vmem>>, vector<1x128xf32>
    %9 = vector.broadcast %8 : vector<1x128xf32> to vector<64x128xf32>
    %10 = arith.addf %7, %9 : vector<64x128xf32>
    %11 = arith.truncf %10 : vector<64x128xf32> to vector<64x128xbf16>
    %c0_7 = arith.constant 0 : index
    %c0_8 = arith.constant 0 : index
    %12 = vector.load %arg7[%c0_7, %c0_8] : memref<128x128xbf16, #tpu.memory_space<vmem>>, vector<128x128xbf16>
    %cst_9 = arith.constant dense<0.000000e+00> : vector<64x128xf32>
    %13 = tpu.matmul %5, %12, %cst_9 {dimension_numbers = #tpu.dot_dimension_numbers<[1], [0], [0], [1], [0, 0, 1, 1], [], []>} : vector<64x128xbf16>, vector<128x128xbf16>, vector<64x128xf32> -> vector<64x128xf32>
    %c0_10 = arith.constant 0 : index
    %c0_11 = arith.constant 0 : index
    %14 = vector.load %arg11[%c0_10, %c0_11] : memref<1x128xf32, #tpu.memory_space<vmem>>, vector<1x128xf32>
    %15 = vector.broadcast %14 : vector<1x128xf32> to vector<64x128xf32>
    %16 = arith.addf %13, %15 : vector<64x128xf32>
    %17 = arith.truncf %16 : vector<64x128xf32> to vector<64x128xbf16>
    %c0_12 = arith.constant 0 : index
    %c0_13 = arith.constant 0 : index
    %18 = vector.load %arg14[%c0_12, %c0_13] : memref<64x128xbf16, #tpu.memory_space<vmem>>, vector<64x128xbf16>
    %cst_14 = arith.constant dense<0.000000e+00> : vector<64x64xf32>
    %19 = tpu.matmul %18, %11, %cst_14 {dimension_numbers = #tpu.dot_dimension_numbers<[1], [1], [0], [0], [0, 0, 1, 0], [], []>} : vector<64x128xbf16>, vector<64x128xbf16>, vector<64x64xf32> -> vector<64x64xf32>
    %c0_15 = arith.constant 0 : index
    %c0_16 = arith.constant 0 : index
    %20 = vector.load %arg15[%c0_15, %c0_16] : memref<64x1xf32, #tpu.memory_space<vmem>>, vector<64x1xf32>
    %cst_17 = arith.constant dense<0xFF800000> : vector<64xf32>
    %21 = vector.multi_reduction <maximumf>, %19, %cst_17 [1] : vector<64x64xf32> to vector<64xf32>
    %22 = vector.shape_cast %21 : vector<64xf32> to vector<64x1xf32>
    %23 = arith.maximumf %20, %22 : vector<64x1xf32>
    %24 = arith.subf %20, %23 : vector<64x1xf32>
    %25 = math.exp %24 : vector<64x1xf32>
    %26 = vector.broadcast %23 : vector<64x1xf32> to vector<64x64xf32>
    %27 = arith.subf %19, %26 : vector<64x64xf32>
    %28 = math.exp %27 : vector<64x64xf32>
    %c0_18 = arith.constant 0 : index
    %c0_19 = arith.constant 0 : index
    %29 = vector.load %arg16[%c0_18, %c0_19] : memref<64x1xf32, #tpu.memory_space<vmem>>, vector<64x1xf32>
    %30 = arith.mulf %25, %29 : vector<64x1xf32>
    %cst_20 = arith.constant dense<0.000000e+00> : vector<64xf32>
    %31 = vector.multi_reduction <add>, %28, %cst_20 [1] : vector<64x64xf32> to vector<64xf32>
    %32 = vector.shape_cast %31 : vector<64xf32> to vector<64x1xf32>
    %33 = arith.addf %30, %32 : vector<64x1xf32>
    %c0_21 = arith.constant 0 : index
    %c0_22 = arith.constant 0 : index
    %34 = vector.load %arg16[%c0_21, %c0_22] : memref<64x1xf32, #tpu.memory_space<vmem>>, vector<64x1xf32>
    tpu.vector_store %arg16[%c0_21, %c0_22], %33 {strides = array<i32>} : memref<64x1xf32, #tpu.memory_space<vmem>>, vector<64x1xf32>,
    %c0_23 = arith.constant 0 : index
    %c0_24 = arith.constant 0 : index
    %35 = vector.load %arg17[%c0_23, %c0_24] : memref<64x128xf32, #tpu.memory_space<vmem>>, vector<64x128xf32>
    %36 = vector.broadcast %25 : vector<64x1xf32> to vector<64x128xf32>
    %37 = arith.mulf %36, %35 : vector<64x128xf32>
    %38 = arith.truncf %28 : vector<64x64xf32> to vector<64x64xbf16>
    %cst_25 = arith.constant dense<0.000000e+00> : vector<64x128xf32>
    %39 = tpu.matmul %38, %17, %cst_25 {dimension_numbers = #tpu.dot_dimension_numbers<[1], [0], [0], [1], [0, 0, 1, 1], [], []>} : vector<64x64xbf16>, vector<64x128xbf16>, vector<64x128xf32> -> vector<64x128xf32>
    %40 = arith.addf %37, %39 : vector<64x128xf32>
    %c0_26 = arith.constant 0 : index
    %c0_27 = arith.constant 0 : index
    %41 = vector.load %arg17[%c0_26, %c0_27] : memref<64x128xf32, #tpu.memory_space<vmem>>, vector<64x128xf32>
    tpu.vector_store %arg17[%c0_26, %c0_27], %40 {strides = array<i32>} : memref<64x128xf32, #tpu.memory_space<vmem>>, vector<64x128xf32>,
    %c0_28 = arith.constant 0 : index
    %c0_29 = arith.constant 0 : index
    %42 = vector.load %arg15[%c0_28, %c0_29] : memref<64x1xf32, #tpu.memory_space<vmem>>, vector<64x1xf32>
    tpu.vector_store %arg15[%c0_28, %c0_29], %23 {strides = array<i32>} : memref<64x1xf32, #tpu.memory_space<vmem>>, vector<64x1xf32>,
    %c0_i32_30 = arith.constant 0 : i32
    %43 = arith.cmpi eq, %arg2, %c0_i32_30 : i32
    %44 = arith.extui %43 : i1 to i32
    %c0_i32_31 = arith.constant 0 : i32
    %45 = arith.cmpi ne, %44, %c0_i32_31 : i32
    scf.if %45 {
      %c0_32 = arith.constant 0 : index
      %c0_33 = arith.constant 0 : index
      %46 = vector.load %arg17[%c0_32, %c0_33] : memref<64x128xf32, #tpu.memory_space<vmem>>, vector<64x128xf32>
      %c0_34 = arith.constant 0 : index
      %c0_35 = arith.constant 0 : index
      %47 = vector.load %arg16[%c0_34, %c0_35] : memref<64x1xf32, #tpu.memory_space<vmem>>, vector<64x1xf32>
      %48 = tpu.reciprocal %47 {approx = true} : vector<64x1xf32> -> vector<64x1xf32>
      %49 = vector.broadcast %48 : vector<64x1xf32> to vector<64x128xf32>
      %50 = arith.mulf %46, %49 : vector<64x128xf32>
      %51 = arith.truncf %50 : vector<64x128xf32> to vector<64x128xbf16>
      %c0_36 = arith.constant 0 : index
      %c0_37 = arith.constant 0 : index
      %52 = vector.load %arg8[%c0_36, %c0_37] : memref<128x128xbf16, #tpu.memory_space<vmem>>, vector<128x128xbf16>
      %cst_38 = arith.constant dense<0.000000e+00> : vector<64x128xf32>
      %53 = tpu.matmul %51, %52, %cst_38 {dimension_numbers = #tpu.dot_dimension_numbers<[1], [0], [0], [1], [0, 0, 1, 1], [], []>} : vector<64x128xbf16>, vector<128x128xbf16>, vector<64x128xf32> -> vector<64x128xf32>
      %c0_39 = arith.constant 0 : index
      %c0_40 = arith.constant 0 : index
      %54 = vector.load %arg12[%c0_39, %c0_40] : memref<1x128xf32, #tpu.memory_space<vmem>>, vector<1x128xf32>
      %55 = vector.broadcast %54 : vector<1x128xf32> to vector<64x128xf32>
      %56 = arith.addf %53, %55 : vector<64x128xf32>
      %c0_41 = arith.constant 0 : index
      %c0_42 = arith.constant 0 : index
      %c0_43 = arith.constant 0 : index
      %57 = vector.load %arg3[%c0_41, %c0_42, %c0_43] : memref<1x64x128xf32, #tpu.memory_space<vmem>>, vector<1x64x128xf32>
      %58 = vector.shape_cast %57 : vector<1x64x128xf32> to vector<64x128xf32>
      %59 = arith.addf %56, %58 : vector<64x128xf32>
      %c0_44 = arith.constant 0 : index
      %c0_45 = arith.constant 0 : index
      %c0_46 = arith.constant 0 : index
      %60 = vector.load %arg13[%c0_44, %c0_45, %c0_46] : memref<1x64x128xf32, #tpu.memory_space<vmem>>, vector<1x64x128xf32>
      %61 = vector.shape_cast %60 : vector<1x64x128xf32> to vector<64x128xf32>
      %62 = vector.shape_cast %59 : vector<64x128xf32> to vector<1x64x128xf32>
      tpu.vector_store %arg13[%c0_44, %c0_45, %c0_46], %62 {strides = array<i32>} : memref<1x64x128xf32, #tpu.memory_space<vmem>>, vector<1x64x128xf32>,
    } else {
    }
    return
  }
  func.func @transform_0(%arg0: i32, %arg1: i32, %arg2: i32) -> (i32, i32, i32) {
    %c0_i32 = arith.constant 0 : i32
    %c0_i32_0 = arith.constant 0 : i32
    return %arg0, %arg1, %c0_i32 : i32, i32, i32
  }
  func.func @transform_1(%arg0: i32, %arg1: i32, %arg2: i32) -> (i32, i32, i32) {
    %c0_i32 = arith.constant 0 : i32
    %c0_i32_0 = arith.constant 0 : i32
    return %arg0, %arg2, %c0_i32 : i32, i32, i32
  }
  func.func @transform_2(%arg0: i32, %arg1: i32, %arg2: i32) -> (i32, i32) {
    %c0_i32 = arith.constant 0 : i32
    %c0_i32_0 = arith.constant 0 : i32
    %c0_i32_1 = arith.constant 0 : i32
    return %c0_i32, %c0_i32_0 : i32, i32
  }
  func.func @transform_3(%arg0: i32, %arg1: i32, %arg2: i32) -> (i32, i32) {
    %c0_i32 = arith.constant 0 : i32
    %c0_i32_0 = arith.constant 0 : i32
    %c0_i32_1 = arith.constant 0 : i32
    return %c0_i32, %c0_i32_0 : i32, i32
  }
  func.func @transform_4(%arg0: i32, %arg1: i32, %arg2: i32) -> (i32, i32) {
    %c0_i32 = arith.constant 0 : i32
    %c0_i32_0 = arith.constant 0 : i32
    %c0_i32_1 = arith.constant 0 : i32
    return %c0_i32, %c0_i32_0 : i32, i32
  }
  func.func @transform_5(%arg0: i32, %arg1: i32, %arg2: i32) -> (i32, i32) {
    %c0_i32 = arith.constant 0 : i32
    %c0_i32_0 = arith.constant 0 : i32
    %c0_i32_1 = arith.constant 0 : i32
    return %c0_i32, %c0_i32_0 : i32, i32
  }
  func.func @transform_6(%arg0: i32, %arg1: i32, %arg2: i32) -> (i32, i32) {
    %c0_i32 = arith.constant 0 : i32
    %c0_i32_0 = arith.constant 0 : i32
    %c0_i32_1 = arith.constant 0 : i32
    return %c0_i32, %c0_i32_0 : i32, i32
  }
  func.func @transform_7(%arg0: i32, %arg1: i32, %arg2: i32) -> (i32, i32) {
    %c0_i32 = arith.constant 0 : i32
    %c0_i32_0 = arith.constant 0 : i32
    %c0_i32_1 = arith.constant 0 : i32
    return %c0_i32, %c0_i32_0 : i32, i32
  }
  func.func @transform_8(%arg0: i32, %arg1: i32, %arg2: i32) -> (i32, i32) {
    %c0_i32 = arith.constant 0 : i32
    %c0_i32_0 = arith.constant 0 : i32
    %c0_i32_1 = arith.constant 0 : i32
    return %c0_i32, %c0_i32_0 : i32, i32
  }
  func.func @transform_9(%arg0: i32, %arg1: i32, %arg2: i32) -> (i32, i32) {
    %c0_i32 = arith.constant 0 : i32
    %c0_i32_0 = arith.constant 0 : i32
    %c0_i32_1 = arith.constant 0 : i32
    return %c0_i32, %c0_i32_0 : i32, i32
  }
  func.func @transform_10(%arg0: i32, %arg1: i32, %arg2: i32) -> (i32, i32, i32) {
    %c0_i32 = arith.constant 0 : i32
    %c0_i32_0 = arith.constant 0 : i32
    return %arg0, %arg1, %c0_i32 : i32, i32, i32
  }
}

</mosaic_0001>

<bundles_post_ra>
// kernel: tpu_custom_call.1
= control target key start
LH: loop header
LB: loop body
LE: loop exit
PB: predicated region body
PF: predicated region fallthrough
CT: control target
= control target key end

     0   :  { %s3240_s0 = inlined_call_operand.hbm [shape: f32[2,64,128], index: 0, kind: input, shape index: {}]   ;;  %s3241_s1 = inlined_call_operand.hbm [shape: f32[2,64,128], index: 1, kind: input, shape index: {}]   ;;  %s3242_s2 = inlined_call_operand.hbm [shape: bf16[128,128], index: 2, kind: input, shape index: {}]   ;;  %s3243_s3 = inlined_call_operand.hbm [shape: bf16[128,128], index: 3, kind: input, shape index: {}]   ;;  %s3244_s4 = inlined_call_operand.hbm [shape: bf16[128,128], index: 4, kind: input, shape index: {}]   ;;  %s3245_s5 = inlined_call_operand.hbm [shape: bf16[128,128], index: 5, kind: input, shape index: {}]   ;;  %s3246_s6 = inlined_call_operand.vmem [shape: f32[1,128], index: 6, kind: input, shape index: {}]   ;;  %s3247_s7 = inlined_call_operand.vmem [shape: f32[1,128], index: 7, kind: input, shape index: {}]   ;;  %s3248_s8 = inlined_call_operand.vmem [shape: f32[1,128], index: 8, kind: input, shape index: {}]   ;;  %s3249_s9 = inlined_call_operand.vmem [shape: f32[1,128], index: 9, kind: input, shape index: {}]   ;;  %s3250_s10 = inlined_call_operand.hbm [shape: f32[2,64,128], index: 10, kind: output, shape index: {}]  }
   0x1   :  { %3257 = sst [smem:[#allocation27_spill]] %s3240_s0 }
   0x2   :  { %3258 = sst [smem:[#allocation28_spill]] %s3242_s2 }
   0x3   :  { %3259 = sst [smem:[#allocation29_spill]] %s3243_s3 }
   0x4   :  { %3260 = sst [smem:[#allocation30_spill]] %s3248_s8 }
   0x5   :  { %3261 = sst [smem:[#allocation31_spill]] %s3249_s9 }
   0x6   :  { %3262 = sst [smem:[#allocation32_spill]] %s3250_s10 }
   0x7   :  { %15 = vsyncpa [#allocation7], 0 }
   0x8   :  { %17 = vsyncpa [#allocation7 + $0x1], 0 }
   0x9   :  { %18 = vsyncpa [#allocation10], 0 }
   0xa   :  { %20 = vsyncpa [#allocation10 + $0x1], 0 }
   0xb   :  { %21 = vsyncpa [#allocation13], 0 }
   0xc   :  { %22 = vsyncpa [#allocation16], 0 }
   0xd   :  { %23 = vsyncpa [#allocation8], 0 }
   0xe   :  { %25 = vsyncpa [#allocation8 + $0x1], 0  ;;  %s2625_s13 = smov 0   ;;  %s2627_s14 = smov 0  }
   0xf   :  { %s2629_s15 = smov 0   ;;  %s2631_s16 = smov 0  }
  0x10   :  { %s2633_s17 = smov 0   ;;  %s2635_s18 = smov 0  }
  0x11 LB: > { %3263 = sst [smem:[#allocation24_spill]] %s2532_s13  ;;  %s2656_s19 = sadd.s32 4294967295, %s2552_s18   ;;  %s2552_s18 = sphi %s2635_s18, %s31_s18   ;;  %s2548_s17 = sphi %s2633_s17, %s3298_s17   ;;  %s2544_s16 = sphi %s2631_s16, %s3297_s16   ;;  %s2540_s15 = sphi %s2629_s15, %s3296_s15   ;;  %s2536_s14 = sphi %s2627_s14, %s3295_s14   ;;  %s2532_s13 = sphi %s2625_s13, %s3294_s13  }
  0x12   : > { %3264 = sst [smem:[#allocation25_spill]] %s2544_s16  ;;  %s1820_s20 = sadd.s32 4294967294, %s2552_s18  }
  0x13   : > { %p72_p0 = scmp.ne.s32.totalorder %s2536_s14, %s2532_s13  ;;  %p3253_p1 = scmp.eq.s32.totalorder %s2656_s19, 0 }
  0x14   : > { %p300_p3 = scmp.eq.s32.totalorder %s1820_s20, 1  ;;  %p1821_p5 = scmp.ge.s32.totalorder %s2552_s18, 1 }
  0x15   : > { %p2665_p4 = por %p3253_p1, %p72_p0  ;;  %p307_p7 = scmp.lt.s32.totalorder %s2552_s18, 3 }
  0x16   : > { %p2670_p6 = por %p300_p3, %p72_p0  ;;  %s2554_s24 = smov [#allocation11]  }
  0x17   : > { %s3265_s21 = scalar_select %p2665_p4, 1, 0 }
  0x18   : > { %s3266_s22 = scalar_select %p2670_p6, 1, 0 }
  0x19   : > { %p2675_p8 = pnand %p1821_p5, %p307_p7  ;;  %s319_s25 = sshll.u32 %s2554_s24, 4  ;;  %s2679_s25 = int_to_ptr.vmem [resolvable:$true] %s319_s25 }
  0x1a   : > { %3267 = sst [smem:[#allocation26_spill]] %s3266_s22  ;;  %s2555_s27 = smov [#allocation12]  }
  0x1b   : > { %s3268_s23 = scalar_select %p2675_p8, 1, 0 }
  0x1c   : > { %p2103_p9 = pneg %p2675_p8  ;;  %s332_s28 = sshll.u32 %s2555_s27, 4  ;;  %s2690_s28 = int_to_ptr.vmem [resolvable:$true] %s332_s28 }
  0x1d   : > { %s2556_s29 = smov [#allocation14]   ;;  %s3270_s2 = sld [smem:[#allocation28_spill]] }
  0x1e   : > { %p2686_p11 = pnand %p2103_p9, %p3253_p1  ;;  %s2692_s30 = sshll.u32 %s2556_s29, 4  ;;  %s346_s30 = int_to_ptr.vmem [resolvable:$true] %s2692_s30 }
  0x20   : > { %p2702_p13 = pneg %p2686_p11 }
  0x23   : > { %s2282_s20 = scalar_lea.hbm %s3270_s2, 1024 }
  0x24   : > { %p2283_p12 = scmp.ne.s32.totalorder %s3270_s2, %s2282_s20  ;;  %p2289_p5 = scmp.lt.u32.totalorder %s2282_s20, %s3270_s2 }
  0x26   : > { %p2285_p0 = pnand %p2702_p13, %p2283_p12 }
  0x28   : > { %p2286_p3 = pneg %p2285_p0 }
  0x2a   : > { %p2291_p7 = pnand %p2289_p5, %p2286_p3 }
  0x2c   : > { %2294 = shalt.err (!%p2291_p7)
}
  0x2d   : > { %s2295_s22 = scalar_lea.vmem %s2679_s25, 1024  ;;  %p2303_p2 = scmp.lt.s32.totalorder %s2679_s25, %s2679_s25 }
  0x2e   : > { %p2296_p9 = scmp.ne.s32.totalorder %s2679_s25, %s2295_s22  ;;  %p2304_p6 = scmp.lt.s32.totalorder %s2295_s22, %s2295_s22 }
  0x30   : > { %p2298_p10 = pnand %p2296_p9, %p2702_p13  ;;  %p2305_p12 = por %p2304_p6, %p2303_p2 }
  0x32   : > { %p2299_p1 = pneg %p2298_p10 }
  0x34   : > { %p2306_p0 = pnand %p2305_p12, %p2299_p1 }
  0x36   : > { %2309 = shalt.err (!%p2306_p0)
}
  0x37   : > { %s2557_s11 = smov 64   ;;  %s2558_s12 = smov 4  }
  0x38   : > { %2106 = dma.hbm_to_vmem [thread:$0]  (!%p2686_p11), %s3270_s2, 1024, %s2679_s25, [#allocation10], %s2557_s11, %s2557_s11, %s2558_s12  }
  0x39   : > { %s3272_s3 = sld [smem:[#allocation29_spill]] }
  0x3f   : > { %s2310_s22 = scalar_lea.hbm %s3272_s3, 1024 }
  0x40   : > { %p2311_p1 = scmp.ne.s32.totalorder %s3272_s3, %s2310_s22  ;;  %p2317_p10 = scmp.lt.u32.totalorder %s2310_s22, %s3272_s3 }
  0x42   : > { %p2313_p2 = pnand %p2311_p1, %p2702_p13 }
  0x44   : > { %p2314_p6 = pneg %p2313_p2 }
  0x46   : > { %p2319_p3 = pnand %p2317_p10, %p2314_p6 }
  0x48   : > { %2322 = shalt.err (!%p2319_p3)
}
  0x49   : > { %s2323_s25 = scalar_lea.vmem %s2690_s28, 1024  ;;  %p2331_p12 = scmp.lt.s32.totalorder %s2690_s28, %s2690_s28 }
  0x4a   : > { %p2324_p5 = scmp.ne.s32.totalorder %s2690_s28, %s2323_s25  ;;  %p2332_p0 = scmp.lt.s32.totalorder %s2323_s25, %s2323_s25 }
  0x4c   : > { %p2326_p7 = pnand %p2324_p5, %p2702_p13  ;;  %p2333_p1 = por %p2332_p0, %p2331_p12 }
  0x4e   : > { %p2327_p9 = pneg %p2326_p7 }
  0x50   : > { %p2334_p2 = pnand %p2333_p1, %p2327_p9 }
  0x52   : > { %2337 = shalt.err (!%p2334_p2)
}
  0x53   : > { %2109 = dma.hbm_to_vmem [thread:$0]  (!%p2686_p11), %s3272_s3, 1024, %s2690_s28, [#allocation13], %s2557_s11, %s2557_s11, %s2558_s12  }
  0x54   : > { %s2338_s20 = scalar_lea.hbm %s3244_s4, 1024 }
  0x55   : > { %p2339_p6 = scmp.ne.s32.totalorder %s3244_s4, %s2338_s20  ;;  %p2345_p5 = scmp.lt.u32.totalorder %s2338_s20, %s3244_s4 }
  0x57   : > { %p2341_p10 = pnand %p2339_p6, %p2702_p13 }
  0x59   : > { %p2342_p3 = pneg %p2341_p10 }
  0x5b   : > { %p2347_p7 = pnand %p2345_p5, %p2342_p3 }
  0x5d   : > { %2350 = shalt.err (!%p2347_p7)
}
  0x5e   : > { %s2351_s25 = scalar_lea.vmem %s346_s30, 1024  ;;  %p2359_p1 = scmp.lt.s32.totalorder %s346_s30, %s346_s30 }
  0x5f   : > { %p2352_p9 = scmp.ne.s32.totalorder %s346_s30, %s2351_s25  ;;  %p2360_p2 = scmp.lt.s32.totalorder %s2351_s25, %s2351_s25 }
  0x61   : > { %p2354_p12 = pnand %p2352_p9, %p2702_p13  ;;  %p2361_p4 = por %p2360_p2, %p2359_p1 }
  0x63   : > { %p2355_p0 = pneg %p2354_p12 }
  0x65   : > { %p2362_p8 = pnand %p2361_p4, %p2355_p0 }
  0x67   : > { %2365 = shalt.err (!%p2362_p8)
}
  0x68   : > { %2112 = dma.hbm_to_vmem [thread:$0]  (!%p2686_p11), %s3244_s4, 1024, %s346_s30, [#allocation13], %s2557_s11, %s2557_s11, %s2558_s12  }
  0x69   : > { %s2559_s9 = smov [#allocation15]   ;;  %s2366_s24 = scalar_lea.hbm %s3245_s5, 1024 }
  0x6a   : > { %s358_s10 = sshll.u32 %s2559_s9, 4  ;;  %p2367_p4 = scmp.ne.s32.totalorder %s3245_s5, %s2366_s24  ;;  %s359_s10 = int_to_ptr.vmem [resolvable:$true] %s358_s10 }
  0x6b   : > { %p2373_p10 = scmp.lt.u32.totalorder %s2366_s24, %s3245_s5 }
  0x6c   : > { %p2369_p8 = pnand %p2367_p4, %p2702_p13 }
  0x6e   : > { %p2370_p6 = pneg %p2369_p8 }
  0x70   : > { %p2375_p3 = pnand %p2373_p10, %p2370_p6 }
  0x72   : > { %2378 = shalt.err (!%p2375_p3)
}
  0x73   : > { %s2379_s30 = scalar_lea.vmem %s359_s10, 1024  ;;  %p2387_p12 = scmp.lt.s32.totalorder %s359_s10, %s359_s10 }
  0x74   : > { %p2380_p5 = scmp.ne.s32.totalorder %s359_s10, %s2379_s30  ;;  %p2388_p0 = scmp.lt.s32.totalorder %s2379_s30, %s2379_s30 }
  0x76   : > { %p2382_p7 = pnand %p2380_p5, %p2702_p13  ;;  %p2389_p1 = por %p2388_p0, %p2387_p12 }
  0x78   : > { %p2383_p9 = pneg %p2382_p7 }
  0x7a   : > { %p2390_p2 = pnand %p2389_p1, %p2383_p9 }
  0x7c   : > { %2393 = shalt.err (!%p2390_p2)
}
  0x7d   : > { %2115 = dma.hbm_to_vmem [thread:$0]  (!%p2686_p11), %s3245_s5, 1024, %s359_s10, [#allocation16], %s2557_s11, %s2557_s11, %s2558_s12  }
  0x7e   : > { %s50_s13 = sadd.s32 1, %s2548_s17  ;;  %s59_s26 = sadd.s32 1, %s2540_s15 }
  0x7f   : > { %p52_p13 = scmp.ge.s32.totalorder %s50_s13, 2  ;;  %p66_p4 = scmp.ne.s32.totalorder %s2540_s15, %s2536_s14 }
  0x80   : > { %p67_p8 = scmp.eq.s32.totalorder %s2552_s18, 0  ;;  %p2131_p6 = scmp.lt.s32.totalorder %s2552_s18, 2 }
  0x81   : > { %s3300_s13 = smov (%p52_p13, %s50_s13), 0  ;;  %p3273_p3 = scmp.eq.s32.totalorder %s2656_s19, 1 }
  0x82   : > { %p68_p10 = por %p67_p8, %p66_p4  ;;  %s54_s16 = ssub.s32 %s2548_s17, %s3300_s13 }
  0x83   : > { %p2805_p5 = por %p3273_p3, %p66_p4  ;;  %s384_s20 = sand.u32 1, %s2540_s15  }
  0x84   : > { %p57_p11 = scmp.eq.s32.totalorder %s54_s16, 0  ;;  %s2812_s11 = sshll.u32 %s384_s20, 6 }
  0x85   : > { %s1886_s12 = sshll.u32 %s2548_s17, 10  ;;  %s3275_s0 = sld [smem:[#allocation27_spill]] }
  0x86   : > { %s2816_s10 = scalar_select %p57_p11, %s2540_s15, %s59_s26  }
  0x87   : > { %s388_s22 = scalar_lea.vmem [#allocation6], %s2812_s11  ;;  %p2828_p7 = pnand %p2131_p6, %p68_p10 }
  0x88   : > { %s397_s25 = sshll.u32 %s388_s22, 4  ;;  %s2834_s28 = scalar_lea.sflag [#allocation7], %s384_s20  ;;  %s2832_s25 = int_to_ptr.vmem [resolvable:$true] %s397_s25 }
  0x89   : > { %p2396_p12 = pneg %p2828_p7 }
  0x8b   : > { %s2823_s29 = scalar_lea.hbm %s3275_s0, %s1886_s12  ;;  %s2399_s24 = scalar_lea.hbm %s3275_s0, 2048 }
  0x8c   : > { %s2394_s8 = scalar_lea.hbm %s2823_s29, 1024  ;;  %p2400_p2 = scmp.lt.u32.totalorder %s2823_s29, %s3275_s0 }
  0x8d   : > { %p2395_p9 = scmp.ne.s32.totalorder %s2823_s29, %s2394_s8  ;;  %p2401_p13 = scmp.lt.u32.totalorder %s2399_s24, %s2394_s8 }
  0x8e   : > { %p2403_p8 = scmp.lt.u32.totalorder %s2394_s8, %s2823_s29 }
  0x8f   : > { %p2397_p0 = pnand %p2396_p12, %p2395_p9  ;;  %p2402_p4 = por %p2401_p13, %p2400_p2 }
  0x91   : > { %p2398_p1 = pneg %p2397_p0  ;;  %p2404_p6 = por %p2403_p8, %p2402_p4 }
  0x93   : > { %p2405_p10 = pnand %p2404_p6, %p2398_p1 }
  0x95   : > { %2408 = shalt.err (!%p2405_p10)
}
  0x96   : > { %s2409_s20 = scalar_lea.vmem %s2832_s25, 1024  ;;  %s2560_s26 = smov [#allocation6]  }
  0x97   : > { %p2410_p3 = scmp.ne.s32.totalorder %s2832_s25, %s2409_s20  ;;  %s2414_s16 = sshll.u32 %s2560_s26, 4  ;;  %s2415_s16 = int_to_ptr.vmem [resolvable:$false] %s2414_s16 }
  0x98   : > { %s2416_s27 = scalar_lea.vmem %s2415_s16, 2048  ;;  %p2417_p0 = scmp.lt.s32.totalorder %s2832_s25, %s2415_s16 }
  0x99   : > { %p2412_p11 = pnand %p2410_p3, %p2396_p12  ;;  %p2418_p2 = scmp.lt.s32.totalorder %s2416_s27, %s2409_s20 }
  0x9b   : > { %p2413_p9 = pneg %p2412_p11  ;;  %p2419_p13 = por %p2418_p2, %p2417_p0 }
  0x9d   : > { %p2420_p4 = pnand %p2419_p13, %p2413_p9 }
  0x9f   : > { %2423 = shalt.err (!%p2420_p4)
}
  0xa0   : > { %s2561_s8 = smov 128   ;;  %s2562_s24 = smov 8  }
  0xa1   : > { %2119 = dma.hbm_to_vmem [thread:$0]  (!%p2828_p7), %s2823_s29, 1024, %s2832_s25, %s2834_s28, %s2561_s8, %s2561_s8, %s2562_s24  }
  0xa2   : > { %s2870_s26 = scalar_lea.hbm %s3241_s1, %s1886_s12  ;;  %s411_s16 = scalar_lea.vmem [#allocation9], %s2812_s11 }
  0xa3   : > { %s420_s27 = sshll.u32 %s411_s16, 4  ;;  %s407_s0 = sand.u32 1, %s2552_s18   ;;  %s2874_s27 = int_to_ptr.vmem [resolvable:$true] %s420_s27 }
  0xa4   : > { %s2876_s2 = scalar_lea.sflag [#allocation10], %s407_s0  ;;  %s2424_s3 = scalar_lea.hbm %s2870_s26, 1024 }
  0xa5   : > { %p2425_p1 = scmp.ne.s32.totalorder %s2870_s26, %s2424_s3  ;;  %s2429_s25 = scalar_lea.hbm %s3241_s1, 2048 }
  0xa6   : > { %p2430_p10 = scmp.lt.u32.totalorder %s2870_s26, %s3241_s1  ;;  %p2431_p3 = scmp.lt.u32.totalorder %s2429_s25, %s2424_s3 }
  0xa7   : > { %p2427_p8 = pnand %p2425_p1, %p2396_p12  ;;  %p2433_p9 = scmp.lt.u32.totalorder %s2424_s3, %s2870_s26 }
  0xa8   : > { %p2432_p11 = por %p2431_p3, %p2430_p10 }
  0xa9   : > { %p2428_p6 = pneg %p2427_p8 }
  0xaa   : > { %p2434_p0 = por %p2433_p9, %p2432_p11 }
  0xac   : > { %p2435_p2 = pnand %p2434_p0, %p2428_p6 }
  0xae   : > { %2438 = shalt.err (!%p2435_p2)
}
  0xaf   : > { %s2439_s0 = scalar_lea.vmem %s2874_s27, 1024  ;;  %s2563_s11 = smov [#allocation9]  }
  0xb0   : > { %p2440_p13 = scmp.ne.s32.totalorder %s2874_s27, %s2439_s0  ;;  %s2444_s20 = sshll.u32 %s2563_s11, 4  ;;  %s2445_s20 = int_to_ptr.vmem [resolvable:$false] %s2444_s20 }
  0xb1   : > { %s2446_s16 = scalar_lea.vmem %s2445_s20, 2048  ;;  %p2447_p8 = scmp.lt.s32.totalorder %s2874_s27, %s2445_s20 }
  0xb2   : > { %p2442_p4 = pnand %p2440_p13, %p2396_p12  ;;  %p2448_p10 = scmp.lt.s32.totalorder %s2446_s16, %s2439_s0 }
  0xb4   : > { %p2443_p1 = pneg %p2442_p4  ;;  %p2449_p3 = por %p2448_p10, %p2447_p8 }
  0xb6   : > { %p2450_p11 = pnand %p2449_p3, %p2443_p1 }
  0xb8   : > { %2453 = shalt.err (!%p2450_p11)
}
  0xb9   : > { %2122 = dma.hbm_to_vmem [thread:$0]  (!%p2828_p7), %s2870_s26, 1024, %s2874_s27, %s2876_s2, %s2561_s8, %s2561_s8, %s2562_s24  }
  0xba   : > { %p3277_p12 = scmp.ne.s32.totalorder %s3268_s23, 0 }
  0xbb   : > { %s2908_s3 = sand.u32 (!%p3277_p12), 1, %s2536_s14   ;;  %p3278_p6 = scmp.ne.s32.totalorder (!%p3277_p12), %s3265_s21, 0 }
  0xbc   : > { %432 = sbr.rel (%p3277_p12) target bundleno = 1550 (0x60e), region = 60  ;;  %s2911_s29 = sshll.u32 (!%p3277_p12), %s2908_s3, 6 }
  0xbd   : > { %s435_s30 = scalar_lea.sflag (!%p3277_p12), [#allocation7], %s2908_s3  ;;  %s2915_s12 = scalar_lea.vmem (!%p3277_p12), [#allocation6], %s2911_s29 }
  0xc3   : > { %2507 = dma.done.wait (%p3278_p6), %s435_s30, 1024  }
  0xc4   : > { %2509 = vsyncadd (%p3278_p6), %s435_s30, 4294966272  ;;  %s443_s2 = sand.u32 1, %s2656_s19   ;;  %s2923_s8 = scalar_lea.vmem [#allocation9], %s2911_s29 }
  0xc5   : > { %s444_s23 = scalar_lea.sflag [#allocation10], %s443_s2 }
  0xc6   : > { %2511 = dma.done.wait (%p3278_p6), %s444_s23, 1024  }
  0xc7   : > { %2513 = vsyncadd (%p3278_p6), %s444_s23, 4294966272  ;;  %p3279_p7 = scmp.eq.s32.totalorder %s2656_s19, 0 }
  0xc9   : > { %2515 = dma.done.wait (%p3279_p7), [#allocation10], 1024   ;;  %p3280_p9 = pmov %p3279_p7 }
  0xca   : > { %p3281_p0 = pmov %p3279_p7 }
  0xcb   : > { %2517 = vsyncadd (%p3280_p9), [#allocation10], 4294966272 }
  0xcc   : > { %2519 = dma.done.wait (%p3281_p0), [#allocation13], 2048   ;;  %p3282_p2 = pmov %p3281_p0 }
  0xcd   : > { %p3283_p13 = pmov %p3281_p0 }
  0xce   : > { %2521 = vsyncadd (%p3282_p2), [#allocation13], 4294965248 }
  0xcf   : > { %2523 = dma.done.wait (%p3283_p13), [#allocation16], 1024   ;;  %p3284_p4 = pmov %p3281_p0 }
  0xd0   : > { %v2200_v0 = vld [vmem:[#allocation12] sm:$0xff]   ;;  %v2201_v1 = vld [vmem:[#allocation12 + $0x8] sm:$0xff]   ;;  %v2202_v2 = vld [vmem:[#allocation12 + $0x10] sm:$0xff]   ;;  %vm677_vm0 = vcmask 7168   ;;  %vm1071_vm1 = vcmask 523264   ;;  %s3285_s28 = sld [smem:[#allocation30_spill]] }
  0xd1   : > { %2525 = vsyncadd (%p3284_p4), [#allocation16], 4294966272  ;;  %1977 = vmatprep.subr.bf16.mxu1 %v2200_v0  ;;  %v2207_v3 = vld [vmem:[#allocation11] sm:$0xff]   ;;  %v2203_v4 = vld [vmem:[#allocation12 + $0x18] sm:$0xff]   ;;  %s3286_s11 = sld [smem:[#allocation31_spill]]  ;;  %s3287_s20 = sld [smem:[#allocation25_spill]] }
  0xd2   : > { %1978 = vmatpush3.bf16.msra.mxu1 %v2200_v0  ;;  %1953 = vmatprep.subr.bf16.mxu0 %v2207_v3  ;;  %v2209_v5 = vld [vmem:[#allocation11 + $0x8] sm:$0xff]   ;;  %v702_v6 = vld [vmem:[%s2923_s8] sm:$0xff]  ;;  %v2210_v10 = vld [vmem:[#allocation11 + $0x10] sm:$0xff]   ;;  %s504_s16 = scalar_lea.vmem [#allocation17], %s2911_s29  ;;  %s2567_s24 = smov [#allocation17]  }
  0xd3   : > { %1979 = vmatprep.subr.bf16.mxu1 %v2201_v1  ;;  %1954 = vmatpush3.bf16.msra.mxu0 %v2207_v3  ;;  %v703_v7 = vld [vmem:[%s2923_s8 + $0x8] sm:$0xff]  ;;  %v2204_v8 = vld [vmem:[#allocation12 + $0x20] sm:$0xff]   ;;  %v2211_v11 = vld [vmem:[#allocation11 + $0x18] sm:$0xff]   ;;  %s1665_s30 = sshll.u32 %s504_s16, 4  ;;  %s2458_s26 = sshll.u32 %s2567_s24, 4  ;;  %s3184_s30 = int_to_ptr.vmem [resolvable:$true] %s1665_s30  ;;  %s2459_s26 = int_to_ptr.vmem [resolvable:$false] %s2458_s26 }
  0xd4   : > { %1955 = vmatprep.subr.bf16.mxu0 %v2209_v5  ;;  %v710_v9 = vpack.c.bf16 %v703_v7, %v702_v6  ;;  %v2205_v12 = vld [vmem:[#allocation12 + $0x28] sm:$0xff]   ;;  %v513_v13 = vld [vmem:[%s2915_s12] sm:$0xff]  ;;  %v2206_v16 = vld [vmem:[#allocation12 + $0x30] sm:$0xff]   ;;  %s2454_s21 = scalar_lea.vmem %s3184_s30, 1024  ;;  %s2460_s27 = scalar_lea.vmem %s2459_s26, 2048 }
  0xd5   : > { %v2212_v14 = vld [vmem:[#allocation11 + $0x20] sm:$0xff]   ;;  %v514_v15 = vld [vmem:[%s2915_s12 + $0x8] sm:$0xff]  ;;  %v2208_v19 = vld [vmem:[#allocation12 + $0x38] sm:$0xff]   ;;  %p2455_p1 = scmp.ne.s32.totalorder %s3184_s30, %s2454_s21  ;;  %p2461_p3 = scmp.lt.s32.totalorder %s3184_s30, %s2459_s26 }
  0xd6   : > { %1980 = vmatpush3.bf16.msra.mxu1 %v2201_v1  ;;  %1993 = vmatprep.mubr.bf16.mxu1 %v710_v9  ;;  %v521_v17 = vpack.c.bf16 %v514_v15, %v513_v13  ;;  %v2213_v18 = vld [vmem:[#allocation11 + $0x28] sm:$0xff]   ;;  %v704_v20 = vld [vmem:[%s2923_s8 + $0x10] sm:$0xff]  ;;  %v705_v21 = vld [vmem:[%s2923_s8 + $0x18] sm:$0xff]  ;;  %p2462_p11 = scmp.lt.s32.totalorder %s2460_s27, %s2454_s21 }
  0xd7   : > { %1981 = vmatprep.subr.bf16.mxu1 %v2202_v2  ;;  %1956 = vmatpush3.bf16.msra.mxu0 %v2209_v5  ;;  %v2214_v22 = vld [vmem:[#allocation11 + $0x30] sm:$0xff]   ;;  %v706_v23 = vld [vmem:[%s2923_s8 + $0x20] sm:$0xff]  ;;  %v707_v24 = vld [vmem:[%s2923_s8 + $0x28] sm:$0xff]  ;;  %v2949_v26 = vpack.c.bf16 %v705_v21, %v704_v20  ;;  %s1888_s2 = sshll.u32 %s3287_s20, 10  ;;  %p2456_p8 = pnand %p2455_p1, %p2805_p5 }
  0xd8   : > { %1957 = vmatprep.subr.bf16.mxu0 %v2210_v10  ;;  %1969 = vmatprep.mubr.bf16.mxu0 %v521_v17  ;;  %v2215_v25 = vld [vmem:[#allocation11 + $0x38] sm:$0xff]   ;;  %v2951_v27 = vpack.c.bf16 %v707_v24, %v706_v23  ;;  %v708_v28 = vld [vmem:[%s2923_s8 + $0x30] sm:$0xff]  ;;  %v2964_v32 = vld [vmem:[%s2915_s12 + $0x20] sm:$0xff]  ;;  %p2463_p12 = por %p2462_p11, %p2461_p3 }
  0xd9   : > { %v2956_v29 = vld [vmem:[%s2915_s12 + $0x10] sm:$0xff]  ;;  %v2959_v30 = vld [vmem:[%s2915_s12 + $0x18] sm:$0xff]  ;;  %v518_v33 = vld [vmem:[%s2915_s12 + $0x28] sm:$0xff]  ;;  %p2457_p10 = pneg %p2456_p8 }
  0xda   : > { %1982 = vmatpush3.bf16.msra.mxu1 %v2202_v2  ;;  %v709_v31 = vld [vmem:[%s2923_s8 + $0x38] sm:$0xff]  ;;  %v522_v34 = vpack.c.bf16 %v2959_v30, %v2956_v29  ;;  %v523_v36 = vpack.c.bf16 %v518_v33, %v2964_v32  ;;  %v2974_v37 = vld [vmem:[%s2915_s12 + $0x30] sm:$0xff]  ;;  %v1850_v41 = vld [vmem:[%s3247_s7] ss:$0 sm:$0xff]  ;;  %v2564_v33 = vmov -inf   ;;  %s3288_s8 = sld [smem:[#allocation32_spill]] }
  0xdb   : > { %1983 = vmatprep.subr.bf16.mxu1 %v2203_v4  ;;  %1958 = vmatpush3.bf16.msra.mxu0 %v2210_v10  ;;  %v2969_v35 = vpack.c.bf16 %v709_v31, %v708_v28  ;;  %v2977_v38 = vld [vmem:[%s2915_s12 + $0x38] sm:$0xff]  ;;  %v1841_v50 = vld [vmem:[%s3246_s6] ss:$0 sm:$0xff]  ;;  %v2217_v31 = vld [vmem:[#allocation14 + $0x8] sm:$0xff]   ;;  %680 = vst.msk [vmem:[#allocation3 + $0x10] sm:$0xff] %vm677_vm0, %v2564_v33  ;;  %p2464_p6 = pnand %p2463_p12, %p2457_p10 }
  0xdc   : > { %1959 = vmatprep.subr.bf16.mxu0 %v2211_v11  ;;  %v524_v39 = vpack.c.bf16 %v2977_v38, %v2974_v37  ;;  %v2216_v28 = vld [vmem:[#allocation14] sm:$0xff]   ;;  %678 = vst.msk [vmem:[#allocation3] sm:$0xff] %vm677_vm0, %v2564_v33  ;;  %679 = vst.msk [vmem:[#allocation3 + $0x8] sm:$0xff] %vm677_vm0, %v2564_v33 }
  0xdd   : > { %681 = vst.msk [vmem:[#allocation3 + $0x18] sm:$0xff] %vm677_vm0, %v2564_v33  ;;  %682 = vst.msk [vmem:[#allocation3 + $0x20] sm:$0xff] %vm677_vm0, %v2564_v33 }
  0xde   : > { %1984 = vmatpush3.bf16.msra.mxu1 %v2203_v4  ;;  %683 = vst.msk [vmem:[#allocation3 + $0x28] sm:$0xff] %vm677_vm0, %v2564_v33  ;;  %684 = vst.msk [vmem:[#allocation3 + $0x30] sm:$0xff] %vm677_vm0, %v2564_v33 }
  0xdf   : > { %1985 = vmatprep.subr.bf16.mxu1 %v2204_v8  ;;  %1960 = vmatpush3.bf16.msra.mxu0 %v2211_v11  ;;  %685 = vst.msk [vmem:[#allocation3 + $0x38] sm:$0xff] %vm677_vm0, %v2564_v33 }
  0xe0   : > { %1961 = vmatprep.subr.bf16.mxu0 %v2212_v14  ;;  %s3191_s19 = scalar_lea.hbm %s3288_s8, %s1888_s2 }
  0xe2   : > { %1986 = vmatpush3.bf16.msra.mxu1 %v2204_v8 }
  0xe3   : > { %1987 = vmatprep.subr.bf16.mxu1 %v2205_v12  ;;  %1962 = vmatpush3.bf16.msra.mxu0 %v2212_v14 }
  0xe4   : > { %1963 = vmatprep.subr.bf16.mxu0 %v2213_v18 }
  0xe6   : > { %1988 = vmatpush3.bf16.msra.mxu1 %v2205_v12  ;;  %v3097_v33 = vld [vmem:[#allocation3 + $0x38] sm:$0xff] }
  0xe7   : > { %1989 = vmatprep.subr.bf16.mxu1 %v2206_v16  ;;  %1964 = vmatpush3.bf16.msra.mxu0 %v2213_v18 }
  0xe8   : > { %1965 = vmatprep.subr.bf16.mxu0 %v2214_v22 }
  0xea   : > { %1990 = vmatpush3.bf16.msra.mxu1 %v2206_v16 }
  0xeb   : > { %1991 = vmatprep.subr.bf16.mxu1 %v2208_v19  ;;  %1966 = vmatpush3.bf16.msra.mxu0 %v2214_v22 }
  0xec   : > { %1967 = vmatprep.subr.bf16.mxu0 %v2215_v25 }
  0xee   : > { %1992 = vmatpush3.bf16.msra.mxu1 %v2208_v19 }
  0xef   : > { %1968 = vmatpush3.bf16.msra.mxu0 %v2215_v25 }
  0xf0   : > { %2001 = vmatprep.subr.bf16.mxu0 %v2216_v28 }
  0xf1   : > { %1994 = vmatmul.mubr.bf16.vlgmr.msra.gmra.mrb[0].mxu1 %v2949_v26 }
  0xf2   : > { %1997 = vmatprep.mubr.bf16.mxu1 %v2951_v27  ;;  %1970 = vmatmul.mubr.bf16.vlgmr.msra.gmra.mrb[0].mxu0 %v522_v34  ;;  %v2218_v34 = vld [vmem:[#allocation14 + $0x10] sm:$0xff]  }
  0xf3   : > { %1973 = vmatprep.mubr.bf16.mxu0 %v523_v36  ;;  %2002 = vmatpush3.bf16.msra.mxu0 %v2216_v28  ;;  %v2219_v36 = vld [vmem:[#allocation14 + $0x18] sm:$0xff]  }
  0xf4   : > { %2003 = vmatprep.subr.bf16.mxu0 %v2217_v31 }
  0xf7   : > { %2004 = vmatpush3.bf16.msra.mxu0 %v2217_v31 }
  0xf8   : > { %2005 = vmatprep.subr.bf16.mxu0 %v2218_v34 }
  0xf9   : > { %1998 = vmatmul.mubr.bf16.gmra.mrb[4].mxu1 %v2969_v35 }
  0xfa   : > { %1974 = vmatmul.mubr.bf16.gmra.mrb[4].mxu0 %v524_v39  ;;  %v2220_v39 = vld [vmem:[#allocation14 + $0x20] sm:$0xff]  }
  0xfb   : > { %2017 = vmatprep.mubr.bf16.mxu0 %v710_v9  ;;  %2006 = vmatpush3.bf16.msra.mxu0 %v2218_v34 }
  0xfc   : > { %2007 = vmatprep.subr.bf16.mxu0 %v2219_v36 }
  0xff   : > { %2008 = vmatpush3.bf16.msra.mxu0 %v2219_v36 }
 0x100   : > { %2009 = vmatprep.subr.bf16.mxu0 %v2220_v39 }
 0x103   : > { %2010 = vmatpush3.bf16.msra.mxu0 %v2220_v39 }
 0x1c4   : > { %v1995_v40 = vpop.f32.mrb[0].mxu1 }
 0x1c5   : > { %v819_v42 = vpop.f32.mrb[1].mxu1  ;;  %v828_v44 = vadd.f32 %v1995_v40, %v1850_v41  ;;  %v1971_v52 = vpop.f32.mrb[0].mxu0  ;;  %v2221_v40 = vld [vmem:[#allocation14 + $0x28] sm:$0xff]  }
 0x1c6   : > { %v1996_v43 = vpop.f32.mrb[2].mxu1  ;;  %v820_v47 = vadd.f32 %v1850_v41, %v819_v42  ;;  %v639_v54 = vadd.f32 %v1971_v52, %v1841_v50  ;;  %v630_v55 = vpop.f32.mrb[1].mxu0  ;;  %2011 = vmatprep.subr.bf16.mxu0 %v2221_v40  ;;  %v2223_v42 = vld [vmem:[#allocation14 + $0x38] sm:$0xff]  }
 0x1c7   : > { %v831_v45 = vadd.f32 %v1996_v43, %v1850_v41  ;;  %v822_v46 = vpop.f32.mrb[3].mxu1  ;;  %v631_v58 = vadd.f32 %v1841_v50, %v630_v55  ;;  %v1972_v59 = vpop.f32.mrb[2].mxu0  ;;  %2012 = vmatpush3.bf16.msra.mxu0 %v2221_v40 }
 0x1c8   : > { %v823_v48 = vadd.f32 %v1850_v41, %v822_v46  ;;  %v663_v62 = vmul.f32 0.17677669, %v639_v54  ;;  %v642_v63 = vadd.f32 %v1972_v59, %v1841_v50  ;;  %v633_v0 = vpop.f32.mrb[3].mxu0  ;;  %v3040_v59 = vld [vmem:[#allocation3] sm:$0xff] }
 0x1c9   : > { %v851_v49 = vpack.c.bf16 %v831_v45, %v828_v44  ;;  %v661_v3 = vmul.f32 0.17677669, %v631_v58  ;;  %v634_v4 = vadd.f32 %v1841_v50, %v633_v0  ;;  %v3038_v58 = vld [vmem:[#allocation3 + $0x10] sm:$0xff]  ;;  %v3048_v0 = vld [vmem:[#allocation3 + $0x18] sm:$0xff] }
 0x1ca   : > { %v850_v51 = vpack.c.bf16 %v823_v48, %v820_v47  ;;  %v664_v6 = vmul.f32 0.17677669, %v642_v63 }
 0x1cb   : > { %v662_v8 = vmul.f32 0.17677669, %v634_v4 }
 0x1cc   : > { %2025 = vmatprep.subr.bf16.mxu1 %v850_v51  ;;  %v1999_v53 = vpop.f32.mrb[4].mxu1  ;;  %v670_v10 = vpack.c.bf16 %v664_v6, %v663_v62 }
 0x1cd   : > { %2026 = vmatpush3.bf16.xpose.msra.mxu1 %v850_v51  ;;  %v844_v56 = vadd.f32 %v1999_v53, %v1850_v41  ;;  %v835_v57 = vpop.f32.mrb[5].mxu1  ;;  %v669_v11 = vpack.c.bf16 %v662_v8, %v661_v3  ;;  %v1975_v12 = vpop.f32.mrb[4].mxu0 }
 0x1ce   : > { %2027 = vmatprep.subr.bf16.mxu1 %v851_v49  ;;  %v836_v60 = vadd.f32 %v1850_v41, %v835_v57  ;;  %v2000_v61 = vpop.f32.mrb[6].mxu1  ;;  %v655_v13 = vadd.f32 %v1975_v12, %v1841_v50  ;;  %v646_v14 = vpop.f32.mrb[5].mxu0  ;;  %v2566_v57 = vmov 0.0  }
 0x1cf   : > { %v847_v1 = vadd.f32 %v2000_v61, %v1850_v41  ;;  %v838_v2 = vpop.f32.mrb[7].mxu1  ;;  %2033 = vmatprep.mubr.bf16.mxu1 %v669_v11  ;;  %v647_v15 = vadd.f32 %v1841_v50, %v646_v14  ;;  %v1976_v16 = vpop.f32.mrb[6].mxu0  ;;  %686 = vst.msk [vmem:[#allocation4] sm:$0xff] %vm677_vm0, %v2566_v57  ;;  %687 = vst.msk [vmem:[#allocation4 + $0x8] sm:$0xff] %vm677_vm0, %v2566_v57  ;;  %v3073_v11 = vld [vmem:[#allocation3 + $0x20] sm:$0xff] }
 0x1d0   : > { %v839_v5 = vadd.f32 %v1850_v41, %v838_v2  ;;  %v667_v17 = vmul.f32 0.17677669, %v655_v13  ;;  %v658_v18 = vadd.f32 %v1976_v16, %v1841_v50  ;;  %v649_v19 = vpop.f32.mrb[7].mxu0  ;;  %v2222_v41 = vld [vmem:[#allocation14 + $0x30] sm:$0xff]   ;;  %688 = vst.msk [vmem:[#allocation4 + $0x10] sm:$0xff] %vm677_vm0, %v2566_v57  ;;  %689 = vst.msk [vmem:[#allocation4 + $0x18] sm:$0xff] %vm677_vm0, %v2566_v57 }
 0x1d1   : > { %v853_v7 = vpack.c.bf16 %v847_v1, %v844_v56  ;;  %v665_v20 = vmul.f32 0.17677669, %v647_v15  ;;  %v650_v21 = vadd.f32 %v1841_v50, %v649_v19  ;;  %2013 = vmatprep.subr.bf16.mxu0 %v2222_v41  ;;  %v2565_v56 = vmov 0   ;;  %690 = vst.msk [vmem:[#allocation4 + $0x20] sm:$0xff] %vm677_vm0, %v2566_v57  ;;  %691 = vst.msk [vmem:[#allocation4 + $0x28] sm:$0xff] %vm677_vm0, %v2566_v57  ;;  %v3055_v2 = vld [vmem:[#allocation3 + $0x8] sm:$0xff] }
 0x1d2   : > { %v852_v9 = vpack.c.bf16 %v839_v5, %v836_v60  ;;  %v668_v22 = vmul.f32 0.17677669, %v658_v18  ;;  %2014 = vmatpush3.bf16.msra.mxu0 %v2222_v41  ;;  %2198 = vset.pattern.permute.xlu0 %v2565_v56  ;;  %692 = vst.msk [vmem:[#allocation4 + $0x30] sm:$0xff] %vm677_vm0, %v2566_v57  ;;  %693 = vst.msk [vmem:[#allocation4 + $0x38] sm:$0xff] %vm677_vm0, %v2566_v57  ;;  %v1859_v14 = vld [vmem:[%s3285_s28] ss:$0 sm:$0xff] }
 0x1d3   : > { %v666_v23 = vmul.f32 0.17677669, %v650_v21  ;;  %2015 = vmatprep.subr.bf16.mxu0 %v2223_v42  ;;  %2199 = vset.pattern.permute.xlu1 %v2565_v56 }
 0x1d4   : > { %v672_v24 = vpack.c.bf16 %v668_v22, %v667_v17  ;;  %v3082_v17 = vld [vmem:[#allocation3 + $0x28] sm:$0xff]  ;;  %v3088_v22 = vld [vmem:[#allocation3 + $0x30] sm:$0xff] }
 0x1d5   : > { %2028 = vmatpush3.bf16.xpose.msra.mxu1 %v851_v49  ;;  %v671_v25 = vpack.c.bf16 %v666_v23, %v665_v20 }
 0x1d6   : > { %2029 = vmatprep.subr.bf16.mxu1 %v852_v9  ;;  %2016 = vmatpush3.bf16.msra.mxu0 %v2223_v42 }
 0x1d9   : > { %2018 = vmatmul.mubr.bf16.vlgmr.msra.gmra.mrb[8].mxu0 %v2949_v26 }
 0x1da   : > { %2021 = vmatprep.mubr.bf16.mxu0 %v2951_v27 }
 0x1dd   : > { %2030 = vmatpush3.bf16.xpose.msra.mxu1 %v852_v9 }
 0x1de   : > { %2031 = vmatprep.subr.bf16.mxu1 %v853_v7 }
 0x1e1   : > { %2022 = vmatmul.mubr.bf16.gmra.mrb[12].mxu0 %v2969_v35 }
 0x1e5   : > { %2032 = vmatpush3.bf16.xpose.msra.mxu1 %v853_v7 }
 0x1ec   : > { %2034 = vmatmul.mubr.bf16.vlgmr.msra.gmra.mrb[8].mxu1 %v670_v10 }
 0x1ed   : > { %2037 = vmatprep.mubr.bf16.mxu1 %v671_v25 }
 0x1f4   : > { %2038 = vmatmul.mubr.bf16.gmra.mrb[12].mxu1 %v672_v24 }
 0x2ac   : > { %v2019_v7 = vpop.f32.mrb[8].mxu0 }
 0x2ad   : > { %v959_v9 = vpop.f32.mrb[9].mxu0  ;;  %v968_v23 = vadd.f32 %v2019_v7, %v1859_v14 }
 0x2ae   : > { %v2020_v12 = vpop.f32.mrb[10].mxu0  ;;  %v960_v18 = vadd.f32 %v1859_v14, %v959_v9 }
 0x2af   : > { %v962_v15 = vpop.f32.mrb[11].mxu0  ;;  %v971_v34 = vadd.f32 %v2020_v12, %v1859_v14 }
 0x2b0   : > { %v963_v19 = vadd.f32 %v1859_v14, %v962_v15 }
 0x2b2   : > { %v990_v24 = vpack.c.bf16 %v963_v19, %v960_v18 }
 0x2b4   : > { %v2023_v36 = vpop.f32.mrb[12].mxu0  ;;  %2041 = vmatprep.subr.bf16.mxu0 %v990_v24 }
 0x2b5   : > { %v975_v41 = vpop.f32.mrb[13].mxu0  ;;  %2042 = vmatpush3.bf16.msra.mxu0 %v990_v24  ;;  %v984_v57 = vadd.f32 %v2023_v36, %v1859_v14 }
 0x2bf   : > { %v2998_v43 = vpop.f32.mrb[8].mxu1 }
 0x2c0   : > { %v3000_v44 = vpop.f32.mrb[9].mxu1  ;;  %v1078_v45 = vsel %vm1071_vm1, %v2998_v43, -inf }
 0x2c1   : > { %1079 = vmax.xlane.f32.xlu1 %v1078_v45  ;;  %v3004_v46 = vpop.f32.mrb[10].mxu1  ;;  %v1072_v47 = vsel %vm1071_vm1, %v3000_v44, -inf  ;;  %v991_v45 = vpack.c.bf16 %v971_v34, %v968_v23 }
 0x2c2   : > { %1073 = vmax.xlane.f32.xlu0 %v1072_v47  ;;  %v3008_v26 = vpop.f32.mrb[11].mxu1  ;;  %v1081_v27 = vsel %vm1071_vm1, %v3004_v46, -inf  ;;  %v2024_v47 = vpop.f32.mrb[14].mxu0 }
 0x2c3   : > { %v1075_v35 = vsel %vm1071_vm1, %v3008_v26, -inf  ;;  %2043 = vmatprep.subr.bf16.mxu0 %v991_v45 }
 0x2c4   : > { %2044 = vmatpush3.bf16.msra.mxu0 %v991_v45 }
 0x2c5   : > { %1082 = vmax.xlane.f32.xlu1 %v1081_v27 }
 0x2c6   : > { %1076 = vmax.xlane.f32.xlu0 %v1075_v35 }
 0x2c7   : > { %v3014_v48 = vpop.f32.mrb[12].mxu1 }
 0x2c8   : > { %v3016_v49 = vpop.f32.mrb[13].mxu1  ;;  %v1090_v54 = vsel %vm1071_vm1, %v3014_v48, -inf }
 0x2c9   : > { %v3018_v50 = vpop.f32.mrb[14].mxu1  ;;  %v1084_v51 = vsel %vm1071_vm1, %v3016_v49, -inf }
 0x2ca   : > { %1085 = vmax.xlane.f32.xlu0 %v1084_v51  ;;  %v3022_v52 = vpop.f32.mrb[15].mxu1  ;;  %v1093_v55 = vsel %vm1071_vm1, %v3018_v50, -inf  ;;  %v978_v51 = vpop.f32.mrb[15].mxu0 }
 0x2cb   : > { %v1087_v53 = vsel %vm1071_vm1, %v3022_v52, -inf }
 0x2cc   : > { %1088 = vmax.xlane.f32.xlu1 %v1087_v53  ;;  %v976_v53 = vadd.f32 %v1859_v14, %v975_v41 }
 0x2ce   : > { %1091 = vmax.xlane.f32.xlu0 %v1090_v54  ;;  %v979_v54 = vadd.f32 %v1859_v14, %v978_v51 }
 0x2d0   : > { %1094 = vmax.xlane.f32.xlu1 %v1093_v55  ;;  %v992_v56 = vpack.c.bf16 %v979_v54, %v976_v53 }
 0x2d2   : > { %2045 = vmatprep.subr.bf16.mxu0 %v992_v56 }
 0x2d3   : > { %2046 = vmatpush3.bf16.msra.mxu0 %v992_v56 }
 0x34e   : > { %v1080_v60 = vpop.xlane.xlu1 %1079 }
 0x34f   : > { %v3043_v61 = vmax.f32 %v3038_v58, %v1080_v60  ;;  %v1074_v62 = vpop.xlane.xlu0 %1073  ;;  %v987_v60 = vadd.f32 %v2024_v47, %v1859_v14 }
 0x350   : > { %v3046_v63 = vmax.f32 %v3040_v59, %v1074_v62 }
 0x351   : > { %v1106_v1 = vsub.f32 %v3038_v58, %v3043_v61  ;;  %1404 = vst.msk [vmem:[#allocation3 + $0x10] sm:$0xff] %vm677_vm0, %v3043_v61  ;;  %1140 = vperm.xlu1 %2199, %v3043_v61   ;;  %v993_v62 = vpack.c.bf16 %v987_v60, %v984_v57 }
 0x352   : > { %v1104_v3 = vsub.f32 %v3040_v59, %v3046_v63  ;;  %1402 = vst.msk [vmem:[#allocation3] sm:$0xff] %vm677_vm0, %v3046_v63  ;;  %v1083_v4 = vpop.xlane.xlu1 %1082  ;;  %1130 = vperm.xlu0 %2198, %v3046_v63  }
 0x353   : > { %v3063_v5 = vmax.f32 %v3048_v0, %v1083_v4  ;;  %v1077_v6 = vpop.xlane.xlu0 %1076  ;;  %2047 = vmatprep.subr.bf16.mxu0 %v993_v62 }
 0x354   : > { %v3066_v8 = vmax.f32 %v3055_v2, %v1077_v6  ;;  %2048 = vmatpush3.bf16.msra.mxu0 %v993_v62 }
 0x355   : > { %v1107_v10 = vsub.f32 %v3048_v0, %v3063_v5  ;;  %1405 = vst.msk [vmem:[#allocation3 + $0x18] sm:$0xff] %vm677_vm0, %v3063_v5  ;;  %1145 = vperm.xlu1 %2199, %v3063_v5   ;;  %v2224_v5 = vld [vmem:[#allocation15] sm:$0xff]  }
 0x356   : > { %v1105_v13 = vsub.f32 %v3055_v2, %v3066_v8  ;;  %1403 = vst.msk [vmem:[#allocation3 + $0x8] sm:$0xff] %vm677_vm0, %v3066_v8  ;;  %2057 = vmatprep.subr.bf16.mxu1 %v2224_v5 }
 0x357   : > { %v1086_v16 = vpop.xlane.xlu0 %1085  ;;  %2058 = vmatpush3.bf16.msra.mxu1 %v2224_v5 }
 0x358   : > { %v3085_v20 = vmax.f32 %v3073_v11, %v1086_v16 }
 0x359   : > { %1135 = vperm.xlu1 %2199, %v3066_v8   ;;  %v1089_v21 = vpop.xlane.xlu1 %1088  ;;  %v2225_v8 = vld [vmem:[#allocation15 + $0x8] sm:$0xff]  }
 0x35a   : > { %v1108_v25 = vsub.f32 %v3073_v11, %v3085_v20  ;;  %1406 = vst.msk [vmem:[#allocation3 + $0x20] sm:$0xff] %vm677_vm0, %v3085_v20  ;;  %v3095_v28 = vmax.f32 %v3082_v17, %v1089_v21  ;;  %2059 = vmatprep.subr.bf16.mxu1 %v2225_v8  ;;  %v2227_v11 = vld [vmem:[#allocation15 + $0x18] sm:$0xff]  }
 0x35b   : > { %v1092_v31 = vpop.xlane.xlu0 %1091  ;;  %2060 = vmatpush3.bf16.msra.mxu1 %v2225_v8 }
 0x35c   : > { %v1109_v39 = vsub.f32 %v3082_v17, %v3095_v28  ;;  %1407 = vst.msk [vmem:[#allocation3 + $0x28] sm:$0xff] %vm677_vm0, %v3095_v28  ;;  %v3104_v40 = vmax.f32 %v3088_v22, %v1092_v31  ;;  %v1120_v2 = vmul.f32 1.442695, %v1108_v25  ;;  %v1195_v25 = vld [vmem:[#allocation4 + $0x18] sm:$0xff] }
 0x35d   : > { %v1095_v42 = vpop.xlane.xlu1 %1094 }
 0x35e   : > { %v1110_v27 = vsub.f32 %v3088_v22, %v3104_v40  ;;  %1408 = vst.msk [vmem:[#allocation3 + $0x30] sm:$0xff] %vm677_vm0, %v3104_v40  ;;  %v3111_v35 = vmax.f32 %v3097_v33, %v1095_v42  ;;  %1160 = vperm.xlu1 %2199, %v3104_v40   ;;  %v1122_v59 = vmul.f32 1.442695, %v1109_v39 }
 0x360   : > { %v1111_v55 = vsub.f32 %v3097_v33, %v3111_v35  ;;  %1409 = vst.msk [vmem:[#allocation3 + $0x38] sm:$0xff] %vm677_vm0, %v3111_v35  ;;  %v1124_v39 = vmul.f32 1.442695, %v1110_v27 }
 0x362   : > { %1150 = vperm.xlu1 %2199, %v3085_v20  }
 0x366   : > { %1155 = vperm.xlu1 %2199, %v3095_v28  }
 0x36a   : > { %1165 = vperm.xlu1 %2199, %v3111_v35  }
 0x3d0   : > { %v1141_v4 = vpop.permute.xlu1 %1140 }
 0x3d1   : > { %v1170_v6 = vsub.f32 %v2998_v43, %v1141_v4  ;;  %v1131_v7 = vpop.permute.xlu0 %1130 }
 0x3d2   : > { %v1168_v9 = vsub.f32 %v3000_v44, %v1131_v7 }
 0x3d3   : > { %v1180_v12 = vmul.f32 1.442695, %v1170_v6 }
 0x3d4   : > { %v1176_v15 = vmul.f32 1.442695, %v1168_v9  ;;  %v1146_v16 = vpop.permute.xlu1 %1145 }
 0x3d5   : > { %v1171_v14 = vsub.f32 %v3004_v46, %v1146_v16 }
 0x3d6   : > { %2232 = vpow2.f32 %v1176_v15 }
 0x3d7   : > { %v1182_v18 = vmul.f32 1.442695, %v1171_v14  ;;  %2234 = vpow2.f32 %v1180_v12 }
 0x3d8   : > { %v1136_v19 = vpop.permute.xlu1 %1135 }
 0x3d9   : > { %2236 = vpow2.f32 %v1182_v18  ;;  %v1169_v21 = vsub.f32 %v3008_v26, %v1136_v19  ;;  %v1114_v19 = vmul.f32 1.442695, %v1105_v13  ;;  %v1192_v13 = vld [vmem:[#allocation4] sm:$0xff] }
 0x3db   : > { %v1178_v23 = vmul.f32 1.442695, %v1169_v21  ;;  %v1112_v21 = vmul.f32 1.442695, %v1104_v3 }
 0x3dd   : > { %2238 = vpow2.f32 %v1178_v23  ;;  %v1161_v24 = vpop.permute.xlu1 %1160  ;;  %v1116_v23 = vmul.f32 1.442695, %v1106_v1 }
 0x3de   : > { %v1174_v43 = vsub.f32 %v3014_v48, %v1161_v24  ;;  %v1118_v24 = vmul.f32 1.442695, %v1107_v10  ;;  %v2226_v10 = vld [vmem:[#allocation15 + $0x10] sm:$0xff]  }
 0x3df   : > { %2061 = vmatprep.subr.bf16.mxu1 %v2226_v10 }
 0x3e0   : > { %v2233_v31 = vpop.eup %2232  ;;  %v1188_v45 = vmul.f32 1.442695, %v1174_v43  ;;  %2062 = vmatpush3.bf16.msra.mxu1 %v2226_v10  ;;  %v1193_v43 = vld [vmem:[#allocation4 + $0x8] sm:$0xff] }
 0x3e1   : > { %v1151_v34 = vpop.permute.xlu1 %1150  ;;  %v1208_v44 = vsel %vm1071_vm1, %v2233_v31, 0.0  ;;  %v2235_v36 = vpop.eup %2234  ;;  %2063 = vmatprep.subr.bf16.mxu1 %v2227_v11 }
 0x3e2   : > { %v1172_v41 = vsub.f32 %v3016_v49, %v1151_v34  ;;  %1209 = vadd.xlane.f32.xlu1 %v1208_v44  ;;  %v1214_v4 = vsel %vm1071_vm1, %v2235_v36, 0.0 }
 0x3e3   : > { %v2237_v46 = vpop.eup %2236 }
 0x3e4   : > { %v1306_v42 = vpack.c.bf16 %v2237_v46, %v2235_v36  ;;  %v1184_v47 = vmul.f32 1.442695, %v1172_v41  ;;  %v1217_v51 = vsel %vm1071_vm1, %v2237_v46, 0.0  ;;  %2064 = vmatpush3.bf16.msra.mxu1 %v2227_v11  ;;  %v1126_v36 = vmul.f32 1.442695, %v1111_v55  ;;  %v1198_v55 = vld [vmem:[#allocation4 + $0x30] sm:$0xff] }
 0x3e5   : > { %v1156_v26 = vpop.permute.xlu1 %1155 }
 0x3e6   : > { %2240 = vpow2.f32 %v1184_v47  ;;  %v1173_v53 = vsub.f32 %v3022_v52, %v1156_v26  ;;  %1218 = vadd.xlane.f32.xlu1 %v1217_v51  ;;  %v1196_v47 = vld [vmem:[#allocation4 + $0x20] sm:$0xff] }
 0x3e7   : > { %v2239_v54 = vpop.eup %2238  ;;  %2242 = vpow2.f32 %v1188_v45 }
 0x3e8   : > { %v1186_v48 = vmul.f32 1.442695, %v1173_v53  ;;  %v1211_v56 = vsel %vm1071_vm1, %v2239_v54, 0.0  ;;  %v1305_v57 = vpack.c.bf16 %v2239_v54, %v2233_v31  ;;  %v1197_v53 = vld [vmem:[#allocation4 + $0x28] sm:$0xff] }
 0x3e9   : > { %1212 = vadd.xlane.f32.xlu0 %v1211_v56  ;;  %v1166_v49 = vpop.permute.xlu1 %1165 }
 0x3ea   : > { %2244 = vpow2.f32 %v1186_v48  ;;  %v1175_v60 = vsub.f32 %v3018_v50, %v1166_v49  ;;  %2049 = vmatprep.mubr.msk.bf16.mxu0 %vm1071_vm1, %v1305_v57 }
 0x3eb   : > { %2050 = vmatmul.mubr.msk.bf16.vlgmr.msra.gmra.mrb[16].mxu0 %vm1071_vm1, %v1306_v42  ;;  %v1194_v42 = vld [vmem:[#allocation4 + $0x10] sm:$0xff] }
 0x3ec   : > { %v1190_v62 = vmul.f32 1.442695, %v1175_v60 }
 0x3ed   : > { %1215 = vadd.xlane.f32.xlu0 %v1214_v4  ;;  %v1199_v4 = vld [vmem:[#allocation4 + $0x38] sm:$0xff] }
 0x3ee   : > { %2246 = vpow2.f32 %v1190_v62 }
 0x3ef   : > { %2248 = vpow2.f32 %v1114_v19  ;;  %v2229_v19 = vld [vmem:[#allocation15 + $0x28] sm:$0xff]  }
 0x3f0   : > { %v2241_v52 = vpop.eup %2240  ;;  %2250 = vpow2.f32 %v1112_v21 }
 0x3f1   : > { %v1220_v6 = vsel %vm1071_vm1, %v2241_v52, 0.0  ;;  %v2243_v7 = vpop.eup %2242  ;;  %2252 = vpow2.f32 %v1116_v23 }
 0x3f2   : > { %1221 = vadd.xlane.f32.xlu0 %v1220_v6  ;;  %v1226_v12 = vsel %vm1071_vm1, %v2243_v7, 0.0  ;;  %2254 = vpow2.f32 %v1118_v24 }
 0x3f3   : > { %2256 = vpow2.f32 %v1120_v2  ;;  %v2230_v2 = vld [vmem:[#allocation15 + $0x30] sm:$0xff]  }
 0x3f4   : > { %v2245_v9 = vpop.eup %2244  ;;  %2258 = vpow2.f32 %v1122_v59 }
 0x3f5   : > { %v1223_v15 = vsel %vm1071_vm1, %v2245_v9, 0.0  ;;  %v1307_v50 = vpack.c.bf16 %v2245_v9, %v2241_v52  ;;  %2260 = vpow2.f32 %v1124_v39 }
 0x3f6   : > { %1227 = vadd.xlane.f32.xlu0 %v1226_v12  ;;  %1224 = vadd.xlane.f32.xlu1 %v1223_v15  ;;  %2262 = vpow2.f32 %v1126_v36 }
 0x3f7   : > { %2053 = vmatprep.mubr.msk.bf16.mxu0 %vm1071_vm1, %v1307_v50 }
 0x3f8   : > { %v2247_v16 = vpop.eup %2246 }
 0x3f9   : > { %v1229_v14 = vsel %vm1071_vm1, %v2247_v16, 0.0  ;;  %v1308_v18 = vpack.c.bf16 %v2247_v16, %v2243_v7  ;;  %v2249_v58 = vpop.eup %2248 }
 0x3fa   : > { %1230 = vadd.xlane.f32.xlu1 %v1229_v14  ;;  %v2251_v61 = vpop.eup %2250  ;;  %v1201_v41 = vmul.f32 %v2249_v58, %v1193_v43  ;;  %v2228_v14 = vld [vmem:[#allocation15 + $0x20] sm:$0xff]  }
 0x3fb   : > { %2054 = vmatmul.mubr.msk.bf16.gmra.mrb[20].mxu0 %vm1071_vm1, %v1308_v18  ;;  %v2253_v63 = vpop.eup %2252  ;;  %v1200_v17 = vmul.f32 %v2251_v61, %v1192_v13  ;;  %2065 = vmatprep.subr.bf16.mxu1 %v2228_v14 }
 0x3fc   : > { %v2255_v1 = vpop.eup %2254  ;;  %v1202_v22 = vmul.f32 %v2253_v63, %v1194_v42  ;;  %2066 = vmatpush3.bf16.msra.mxu1 %v2228_v14 }
 0x3fd   : > { %v2257_v0 = vpop.eup %2256  ;;  %v1203_v31 = vmul.f32 %v2255_v1, %v1195_v25  ;;  %2067 = vmatprep.subr.bf16.mxu1 %v2229_v19 }
 0x3fe   : > { %v2259_v3 = vpop.eup %2258  ;;  %v1204_v26 = vmul.f32 %v2257_v0, %v1196_v47 }
 0x3ff   : > { %v2261_v33 = vpop.eup %2260  ;;  %v1205_v57 = vmul.f32 %v2259_v3, %v1197_v53 }
 0x400   : > { %v1206_v56 = vmul.f32 %v2261_v33, %v1198_v55  ;;  %v2263_v49 = vpop.eup %2262  ;;  %2068 = vmatpush3.bf16.msra.mxu1 %v2229_v19 }
 0x401   : > { %v1207_v9 = vmul.f32 %v2263_v49, %v1199_v4  ;;  %2069 = vmatprep.subr.bf16.mxu1 %v2230_v2 }
 0x404   : > { %2070 = vmatpush3.bf16.msra.mxu1 %v2230_v2 }
 0x40b   : > { %1264 = vperm.xlu1 %2199, %v2249_v58  }
 0x40c   : > { %1259 = vperm.xlu0 %2198, %v2251_v61  }
 0x40f   : > { %1269 = vperm.xlu1 %2199, %v2253_v63   ;;  %v2231_v63 = vld [vmem:[#allocation15 + $0x38] sm:$0xff]  }
 0x410   : > { %1274 = vperm.xlu0 %2198, %v2255_v1   ;;  %2071 = vmatprep.subr.bf16.mxu1 %v2231_v63 }
 0x411   : > { %2072 = vmatpush3.bf16.msra.mxu1 %v2231_v63 }
 0x413   : > { %1279 = vperm.xlu1 %2199, %v2257_v0  }
 0x414   : > { %1284 = vperm.xlu0 %2198, %v2259_v3  }
 0x46f   : > { %v1210_v20 = vpop.xlane.xlu1 %1209 }
 0x470   : > { %v1232_v28 = vadd.f32 %v1210_v20, %v1200_v17 }
 0x472   : > { %1241 = vst.msk [vmem:[#allocation4] sm:$0xff] %vm677_vm0, %v1232_v28 }
 0x473   : > { %v1219_v34 = vpop.xlane.xlu1 %1218 }
 0x474   : > { %v1235_v44 = vadd.f32 %v1219_v34, %v1203_v31 }
 0x476   : > { %1244 = vst.msk [vmem:[#allocation4 + $0x18] sm:$0xff] %vm677_vm0, %v1235_v44  ;;  %v1213_v46 = vpop.xlane.xlu0 %1212 }
 0x477   : > { %v1233_v45 = vadd.f32 %v1213_v46, %v1201_v41 }
 0x479   : > { %1242 = vst.msk [vmem:[#allocation4 + $0x8] sm:$0xff] %vm677_vm0, %v1233_v45  ;;  %v1421_v12 = vld [vmem:[#allocation4] sm:$0xff] }
 0x47a   : > { %v1216_v40 = vpop.xlane.xlu0 %1215 }
 0x47b   : > { %v1234_v27 = vadd.f32 %v1216_v40, %v1202_v22 }
 0x47d   : > { %1243 = vst.msk [vmem:[#allocation4 + $0x10] sm:$0xff] %vm677_vm0, %v1234_v27  ;;  %v1424_v51 = vld [vmem:[#allocation4 + $0x18] sm:$0xff] }
 0x47e   : > { %2264 = vrcp.f32 %v1424_v51 }
 0x47f   : > { %v1222_v35 = vpop.xlane.xlu0 %1221 }
 0x480   : > { %v1236_v54 = vadd.f32 %v1222_v35, %v1204_v26  ;;  %v1422_v48 = vld [vmem:[#allocation4 + $0x8] sm:$0xff] }
 0x481   : > { %2266 = vrcp.f32 %v1422_v48 }
 0x482   : > { %1245 = vst.msk [vmem:[#allocation4 + $0x20] sm:$0xff] %vm677_vm0, %v1236_v54 }
 0x483   : > { %v1228_v60 = vpop.xlane.xlu0 %1227  ;;  %v1225_v62 = vpop.xlane.xlu1 %1224 }
 0x484   : > { %v1238_v52 = vadd.f32 %v1228_v60, %v1206_v56  ;;  %v1237_v6 = vadd.f32 %v1225_v62, %v1205_v57  ;;  %v1423_v7 = vld [vmem:[#allocation4 + $0x10] sm:$0xff] }
 0x485   : > { %2268 = vrcp.f32 %v1423_v7 }
 0x486   : > { %1247 = vst.msk [vmem:[#allocation4 + $0x30] sm:$0xff] %vm677_vm0, %v1238_v52  ;;  %1246 = vst.msk [vmem:[#allocation4 + $0x28] sm:$0xff] %vm677_vm0, %v1237_v6  ;;  %2270 = vrcp.f32 %v1421_v12 }
 0x487   : > { %v1231_v15 = vpop.xlane.xlu1 %1230 }
 0x488   : > { %v2265_v50 = vpop.eup %2264  ;;  %v1239_v16 = vadd.f32 %v1231_v15, %v1207_v9 }
 0x489   : > { %1454 = vperm.xlu0 %2198, %v2265_v50   ;;  %v1425_v23 = vld [vmem:[#allocation4 + $0x20] sm:$0xff] }
 0x48a   : > { %1248 = vst.msk [vmem:[#allocation4 + $0x38] sm:$0xff] %vm677_vm0, %v1239_v16 }
 0x48b   : > { %v2267_v18 = vpop.eup %2266  ;;  %v1260_v39 = vpop.permute.xlu0 %1259 }
 0x48c   : > { %v1265_v43 = vpop.permute.xlu1 %1264  ;;  %v1297_v47 = vmul.f32 0.0, %v1260_v39 }
 0x48d   : > { %1444 = vperm.xlu0 %2198, %v2267_v18   ;;  %v1426_v21 = vld [vmem:[#allocation4 + $0x28] sm:$0xff]  ;;  %v1427_v58 = vld [vmem:[#allocation4 + $0x30] sm:$0xff]  ;;  %v1298_v51 = vmul.f32 0.0, %v1265_v43 }
 0x48e   : > { %2272 = vrcp.f32 %v1426_v21 }
 0x48f   : > { %v2269_v24 = vpop.eup %2268  ;;  %2274 = vrcp.f32 %v1425_v23  ;;  %v1275_v31 = vpop.permute.xlu0 %1274 }
 0x490   : > { %1449 = vperm.xlu1 %2199, %v2269_v24   ;;  %v2271_v61 = vpop.eup %2270  ;;  %v1270_v44 = vpop.permute.xlu1 %1269  ;;  %v1300_v46 = vmul.f32 0.0, %v1275_v31 }
 0x491   : > { %1294 = vperm.xlu0 %2198, %v2263_v49   ;;  %v1428_v59 = vld [vmem:[#allocation4 + $0x38] sm:$0xff]  ;;  %v1299_v42 = vmul.f32 0.0, %v1270_v44 }
 0x492   : > { %2276 = vrcp.f32 %v1428_v59 }
 0x493   : > { %2278 = vrcp.f32 %v1427_v58  ;;  %v1285_v34 = vpop.permute.xlu0 %1284  ;;  %v1872_v58 = vld [vmem:[%s3286_s11] ss:$0 sm:$0xff] }
 0x494   : > { %1439 = vperm.xlu1 %2199, %v2271_v61   ;;  %v1280_v41 = vpop.permute.xlu1 %1279  ;;  %v1302_v62 = vmul.f32 0.0, %v1285_v34 }
 0x495   : > { %v1301_v4 = vmul.f32 0.0, %v1280_v41 }
 0x498   : > { %v2273_v1 = vpop.eup %2272  ;;  %1289 = vperm.xlu1 %2199, %v2261_v33  }
 0x499   : > { %1464 = vperm.xlu0 %2198, %v2273_v1   ;;  %v2275_v0 = vpop.eup %2274 }
 0x49c   : > { %v2277_v3 = vpop.eup %2276  ;;  %1459 = vperm.xlu1 %2199, %v2275_v0  }
 0x49d   : > { %1474 = vperm.xlu0 %2198, %v2277_v3   ;;  %v2279_v5 = vpop.eup %2278 }
 0x4a0   : > { %1469 = vperm.xlu1 %2199, %v2279_v5  }
 0x4be   : > { %v2051_v8 = vpop.f32.mrb[16].mxu0 }
 0x4bf   : > { %v1355_v10 = vpop.f32.mrb[17].mxu0  ;;  %v1388_v45 = vadd.f32 %v2051_v8, %v1299_v42 }
 0x4c0   : > { %v2052_v11 = vpop.f32.mrb[18].mxu0  ;;  %v1386_v35 = vadd.f32 %v1355_v10, %v1297_v47 }
 0x4c1   : > { %v1358_v13 = vpop.f32.mrb[19].mxu0  ;;  %v1389_v22 = vadd.f32 %v2052_v11, %v1300_v46  ;;  %v2280_v11 = vld [vmem:[%s2915_s12] sm:$0xff] }
 0x4c2   : > { %v1387_v55 = vadd.f32 %v1358_v13, %v1298_v51 }
 0x4ce   : > { %v2055_v17 = vpop.f32.mrb[20].mxu0 }
 0x4cf   : > { %v1371_v20 = vpop.f32.mrb[21].mxu0 }
 0x4d0   : > { %v2056_v25 = vpop.f32.mrb[22].mxu0  ;;  %v1390_v6 = vadd.f32 %v1371_v20, %v1301_v4 }
 0x4d1   : > { %v1374_v28 = vpop.f32.mrb[23].mxu0 }
 0x4d2   : > { %v1391_v7 = vadd.f32 %v1374_v28, %v1302_v62 }
 0x508   : > { %v1455_v36 = vpop.permute.xlu0 %1454 }
 0x509   : > { %v1480_v26 = vmul.f32 %v1455_v36, %v1389_v22 }
 0x50c   : > { %v1445_v40 = vpop.permute.xlu0 %1444 }
 0x50d   : > { %v1478_v48 = vmul.f32 %v1445_v40, %v1387_v55 }
 0x50f   : > { %v1450_v27 = vpop.permute.xlu1 %1449 }
 0x510   : > { %v1479_v33 = vmul.f32 %v1450_v27, %v1388_v45  ;;  %v1295_v56 = vpop.permute.xlu0 %1294 }
 0x511   : > { %v1304_v9 = vmul.f32 0.0, %v1295_v56 }
 0x512   : > { %v1486_v53 = vpack.c.bf16 %v1480_v26, %v1479_v33 }
 0x513   : > { %v1440_v54 = vpop.permute.xlu1 %1439  ;;  %v1393_v19 = vadd.f32 %v2056_v25, %v1304_v9  ;;  %v2281_v25 = vld [vmem:[%s2915_s12 + $0x8] sm:$0xff] }
 0x514   : > { %v1477_v57 = vmul.f32 %v1440_v54, %v1386_v35 }
 0x516   : > { %v1485_v49 = vpack.c.bf16 %v1478_v48, %v1477_v57 }
 0x517   : > { %v1290_v60 = vpop.permute.xlu1 %1289 }
 0x518   : > { %v1465_v52 = vpop.permute.xlu0 %1464  ;;  %2073 = vmatprep.mubr.bf16.mxu1 %v1485_v49  ;;  %v1303_v12 = vmul.f32 0.0, %v1290_v60 }
 0x519   : > { %2074 = vmatmul.mubr.bf16.vlgmr.msra.gmra.mrb[16].mxu1 %v1486_v53  ;;  %v1482_v50 = vmul.f32 %v1465_v52, %v1391_v7 }
 0x51a   : > { %v1392_v21 = vadd.f32 %v2055_v17, %v1303_v12 }
 0x51b   : > { %v1460_v15 = vpop.permute.xlu1 %1459 }
 0x51c   : > { %v1481_v16 = vmul.f32 %v1460_v15, %v1390_v6  ;;  %v1475_v14 = vpop.permute.xlu0 %1474 }
 0x51d   : > { %v1484_v24 = vmul.f32 %v1475_v14, %v1393_v19 }
 0x51e   : > { %v1487_v18 = vpack.c.bf16 %v1482_v50, %v1481_v16 }
 0x51f   : > { %v1470_v23 = vpop.permute.xlu1 %1469 }
 0x520   : > { %v1483_v2 = vmul.f32 %v1470_v23, %v1392_v21  ;;  %2077 = vmatprep.mubr.bf16.mxu1 %v1487_v18 }
 0x522   : > { %v1488_v59 = vpack.c.bf16 %v1484_v24, %v1483_v2 }
 0x524   : > { %2078 = vmatmul.mubr.bf16.gmra.mrb[20].mxu1 %v1488_v59 }
 0x5ec   : > { %v2075_v61 = vpop.f32.mrb[16].mxu1 }
 0x5ed   : > { %v1603_v63 = vadd.f32 %v2075_v61, %v1872_v58  ;;  %v1594_v1 = vpop.f32.mrb[17].mxu1 }
 0x5ee   : > { %v1595_v0 = vadd.f32 %v1872_v58, %v1594_v1  ;;  %v2076_v3 = vpop.f32.mrb[18].mxu1 }
 0x5ef   : > { %v1635_v5 = vadd.f32 %v1603_v63, %v2956_v29  ;;  %v1606_v8 = vadd.f32 %v2076_v3, %v1872_v58  ;;  %v1597_v10 = vpop.f32.mrb[19].mxu1 }
 0x5f0   : > { %v1633_v13 = vadd.f32 %v2280_v11, %v1595_v0  ;;  %v1598_v17 = vadd.f32 %v1872_v58, %v1597_v10 }
 0x5f1   : > { %1643 = vst [vmem:[%s504_s16 + $0x10] sm:$0xff] %v1635_v5  ;;  %v1636_v20 = vadd.f32 %v1606_v8, %v2959_v30  ;;  %v1630_v30 = vld [vmem:[%s2915_s12 + $0x28] sm:$0xff]  ;;  %s1650_s12 = scalar_lea.sflag [#allocation8], %s2908_s3 }
 0x5f2   : > { %1641 = vst [vmem:[%s504_s16] sm:$0xff] %v1633_v13  ;;  %v1634_v28 = vadd.f32 %v2281_v25, %v1598_v17 }
 0x5f3   : > { %1644 = vst [vmem:[%s504_s16 + $0x18] sm:$0xff] %v1636_v20 }
 0x5f4   : > { %1642 = vst [vmem:[%s504_s16 + $0x8] sm:$0xff] %v1634_v28 }
 0x5f7   : > { %v2079_v39 = vpop.f32.mrb[20].mxu1 }
 0x5f8   : > { %v1619_v31 = vadd.f32 %v2079_v39, %v1872_v58  ;;  %v1610_v29 = vpop.f32.mrb[21].mxu1 }
 0x5f9   : > { %v1611_v43 = vadd.f32 %v1872_v58, %v1610_v29  ;;  %v2080_v34 = vpop.f32.mrb[22].mxu1 }
 0x5fa   : > { %v1639_v44 = vadd.f32 %v1619_v31, %v2974_v37  ;;  %v1622_v36 = vadd.f32 %v2080_v34, %v1872_v58  ;;  %v1613_v41 = vpop.f32.mrb[23].mxu1 }
 0x5fb   : > { %v1637_v46 = vadd.f32 %v1611_v43, %v2964_v32  ;;  %v1614_v42 = vadd.f32 %v1872_v58, %v1613_v41 }
 0x5fc   : > { %1647 = vst [vmem:[%s504_s16 + $0x30] sm:$0xff] %v1639_v44  ;;  %v1640_v45 = vadd.f32 %v1622_v36, %v2977_v38 }
 0x5fd   : > { %1645 = vst [vmem:[%s504_s16 + $0x20] sm:$0xff] %v1637_v46  ;;  %v1638_v37 = vadd.f32 %v1630_v30, %v1614_v42 }
 0x5fe   : > { %1648 = vst [vmem:[%s504_s16 + $0x38] sm:$0xff] %v1640_v45 }
 0x5ff   : > { %1646 = vst [vmem:[%s504_s16 + $0x28] sm:$0xff] %v1638_v37 }
 0x600   : > { %2467 = shalt.err (!%p2464_p6)
}
 0x601   : > { %s2468_s25 = scalar_lea.hbm %s3191_s19, 1024  ;;  %s2472_s0 = scalar_lea.hbm %s3288_s8, 2048 }
 0x602   : > { %p2469_p7 = scmp.ne.s32.totalorder %s3191_s19, %s2468_s25  ;;  %p2473_p2 = scmp.lt.u32.totalorder %s3191_s19, %s3288_s8 }
 0x603   : > { %p2474_p13 = scmp.lt.u32.totalorder %s2472_s0, %s2468_s25  ;;  %p2476_p1 = scmp.lt.u32.totalorder %s2468_s25, %s3191_s19 }
 0x604   : > { %p2470_p9 = pnand %p2469_p7, %p2805_p5 }
 0x605   : > { %p2475_p4 = por %p2474_p13, %p2473_p2 }
 0x606   : > { %p2471_p0 = pneg %p2470_p9 }
 0x607   : > { %p2477_p8 = por %p2476_p1, %p2475_p4 }
 0x609   : > { %p2478_p10 = pnand %p2477_p8, %p2471_p0 }
 0x60b   : > { %2481 = shalt.err (!%p2478_p10)
}
 0x60c   : > { %s2568_s16 = smov 128   ;;  %s2569_s2 = smov 8  }
 0x60d   : > { %2101 = dma.vmem_to_hbm [thread:$0]  (%p2805_p5), %s3184_s30, 1024, %s3191_s19, %s1650_s12, %s2568_s16, %s2568_s16, %s2569_s2  }
 0x60e PF: > { %s3289_s29 = sld [smem:[#allocation24_spill]]  ;;  %s3290_s23 = sld [smem:[#allocation26_spill]] }
 0x60f   : > { %p3292_p11 = scmp.ge.s32.totalorder %s2552_s18, 2 }
 0x614   : > { %s1680_s21 = sand.u32 1, %s3289_s29   ;;  %p3291_p3 = scmp.ne.s32.totalorder %s3290_s23, 0 }
 0x615   : > { %s1681_s24 = scalar_lea.sflag [#allocation8], %s1680_s21 }
 0x616   : > { %p2124_p12 = pnand %p3292_p11, %p3291_p3 }
 0x618   : > { %2527 = dma.done.wait (!%p2124_p12), %s1681_s24, 1024  }
 0x619   : > { %2529 = vsyncadd (!%p2124_p12), %s1681_s24, 4294966272  ;;  %s31_s18 = sadd.s32 1, %s2552_s18   ;;  %s3293_s9 = smov %s3300_s13 }
 0x61a   : > { %p28_p6 = scmp.ge.s32.totalorder %s31_s18, 4   ;;  %s3294_s13 = smov %s2536_s14 }
 0x61b   : > { %s3295_s14 = smov %s2540_s15  ;;  %s3296_s15 = smov %s2816_s10 }
 0x61c   : > { %s3297_s16 = smov %s2548_s17  ;;  %s3298_s17 = smov %s3293_s9 }
 0x61d   :  { %30 = sbr.rel (!%p28_p6) target bundleno = 17 (0x11), region = 142 }
 0x624   :  { %1686 = vsyncpa [#allocation7], 1 }
 0x625   :  { %1688 = vsyncpa [#allocation7 + $0x1], 1 }
 0x626   :  { %1689 = vsyncpa [#allocation10], 1 }
 0x627   :  { %1691 = vsyncpa [#allocation10 + $0x1], 1 }
 0x628   :  { %1692 = vsyncpa [#allocation13], 1 }
 0x629   :  { %1693 = vsyncpa [#allocation16], 1 }
 0x62a   :  { %1694 = vsyncpa [#allocation8], 1 }
 0x62b   :  { %1696 = vsyncpa [#allocation8 + $0x1], 1 }

</bundles_post_ra>
